<compile_context>
chip_gen: v6e
topology: v6e:2x2x1
jax: 0.10.0
libtpu: 0.0.40
codegen_flags: <defaults>
</compile_context>

<pallas_src>
import math

import jax
import jax.numpy as jnp
from jax.experimental import pallas as pl
from jax.experimental.pallas import tpu as pltpu

# ----------------------------- model sizes ---------------------------------
B = 2        # batch
S = 8        # sequence length
D = 32       # model dim ("size" in the PyTorch module)
H = 4        # attention heads
DH = D // H  # head dim
DFF = 64     # MLP hidden dim
LN_EPS = 1e-6

HI = jax.lax.Precision.HIGHEST   # full-f32 MXU contraction everywhere


# ------------------------------- kernel ------------------------------------
def _layernorm(x, gamma, beta):
    # x: (S, D), gamma/beta: (1, D)
    mu = jnp.mean(x, axis=-1, keepdims=True)
    xc = x - mu
    var = jnp.mean(xc * xc, axis=-1, keepdims=True)
    inv = jax.lax.rsqrt(var + LN_EPS)
    return xc * inv * gamma + beta


def encoder_layer_kernel(x_ref, bias_ref, lnb_ref, wqkv_ref, bqkv_ref,
                         wo_ref, w1_ref, b1_ref, w2_ref, out_ref):
    # One grid step == one batch element (leading batch dim squeezed away).
    x = x_ref[...]            # (S, D)
    bias = bias_ref[...]      # (S, S) additive attention bias (0 / -1e9)

    # packed LayerNorm params and small biases: rows = g1, be1, g2, be2, bo, b2
    g1 = lnb_ref[0:1, :]
    be1 = lnb_ref[1:2, :]
    g2 = lnb_ref[2:3, :]
    be2 = lnb_ref[3:4, :]
    bo = lnb_ref[4:5, :]
    b2 = lnb_ref[5:6, :]

    # ---- sublayer 1: pre-norm multi-head self-attention + residual ----
    xn = _layernorm(x, g1, be1)
    # fused QKV projection; 1/sqrt(DH) already folded into the Q columns
    qkv = jnp.dot(xn, wqkv_ref[...], precision=HI,
                  preferred_element_type=jnp.float32) + bqkv_ref[...]   # (S, 3D)

    dn = (((1,), (1,)), ((), ()))        # contract head-dim of q and k; no batch dims
    attn = None
    for h in range(H):                   # static loop, H is tiny
        lo = h * DH
        qh = qkv[:, lo:lo + DH]                      # (S, DH)
        kh = qkv[:, D + lo:D + lo + DH]              # (S, DH)
        vh = qkv[:, 2 * D + lo:2 * D + lo + DH]      # (S, DH)
        # q @ k^T without an explicit transpose
        scores = jax.lax.dot_general(qh, kh, dn, precision=HI,
                                     preferred_element_type=jnp.float32) + bias
        m = jnp.max(scores, axis=-1, keepdims=True)
        p = jnp.exp(scores - m)
        p = p / jnp.sum(p, axis=-1, keepdims=True)   # exact normalization
        head_out = jnp.dot(p, vh, precision=HI,
                           preferred_element_type=jnp.float32)          # (S, DH)
        # fold "concat heads -> @ Wo" into per-head accumulation on the MXU
        contrib = jnp.dot(head_out, wo_ref[lo:lo + DH, :], precision=HI,
                          preferred_element_type=jnp.float32)           # (S, D)
        attn = contrib if attn is None else attn + contrib

    x1 = x + attn + bo                                                  # residual

    # ---- sublayer 2: pre-norm MLP + residual ----
    xn2 = _layernorm(x1, g2, be2)
    hdn = jnp.dot(xn2, w1_ref[...], precision=HI,
                  preferred_element_type=jnp.float32) + b1_ref[...]
    hdn = jnp.maximum(hdn, 0.0)                                         # ReLU
    mlp = jnp.dot(hdn, w2_ref[...], precision=HI,
                  preferred_element_type=jnp.float32) + b2

    out_ref[...] = x1 + mlp


# ------------------------------- wrapper ------------------------------------
@jax.jit
def encoder_layer(x, mask, params):
    """x: (B, S, D) f32, mask: (B, S, S) f32 (1=attend). Returns (B, S, D)."""
    (g1, be1, wq, bq, wk, bk, wv, bv, wo, bo, g2, be2, w1, b1, w2, b2) = params
    Bn, Sn, Dn = x.shape

    scale = 1.0 / math.sqrt(DH)
    # fused QKV weight / bias, softmax scale folded into the Q slice
    wqkv = jnp.concatenate([wq * scale, wk, wv], axis=1)       # (D, 3D)
    bqkv = jnp.concatenate([bq * scale, bk, bv], axis=1)       # (1, 3D)
    # pack all (1, D) vectors into one small array: g1, be1, g2, be2, bo, b2
    lnb = jnp.concatenate([g1, be1, g2, be2, bo, b2], axis=0)  # (6, D)

    # per-batch additive attention bias: 0 where attend, -1e9 where masked
    bias = (mask - 1.0) * 1e9                                  # (B, S, S)

    def full_spec(shape):
        return pl.BlockSpec(shape, lambda b: (0,) * len(shape))

    out = pl.pallas_call(
        encoder_layer_kernel,
        out_shape=jax.ShapeDtypeStruct((Bn, Sn, Dn), jnp.float32),
        grid=(Bn,),
        in_specs=[
            pl.BlockSpec((None, Sn, Dn), lambda b: (b, 0, 0)),   # x      (per batch)
            pl.BlockSpec((None, Sn, Sn), lambda b: (b, 0, 0)),   # bias   (per batch)
            full_spec((6, Dn)),            # packed LN params / small biases
            full_spec((Dn, 3 * Dn)),       # wqkv
            full_spec((1, 3 * Dn)),        # bqkv
            full_spec((Dn, Dn)),           # wo
            full_spec((Dn, DFF)),          # w1
            full_spec((1, DFF)),           # b1
            full_spec((DFF, Dn)),          # w2
        ],
        out_specs=pl.BlockSpec((None, Sn, Dn), lambda b: (b, 0, 0)),
        input_output_aliases={0: 0},       # output reuses x's HBM buffer
        compiler_params=pltpu.CompilerParams(
            dimension_semantics=("parallel",)),
    )(x, bias, lnb, wqkv, bqkv, wo, w1, b1, w2)

    return out


# --------------------------- pure-JAX reference ------------------------------
def encoder_layer_ref(x, mask, params):
    (g1, be1, wq, bq, wk, bk, wv, bv, wo, bo, g2, be2, w1, b1, w2, b2) = params

    def ln(z, g, b):
        mu = jnp.mean(z, -1, keepdims=True)
        var = jnp.mean((z - mu) ** 2, -1, keepdims=True)
        return (z - mu) / jnp.sqrt(var + LN_EPS) * g + b

    def mm(a, b):
        return jnp.dot(a, b, precision=HI)

    xn = ln(x, g1, be1)
    q = (mm(xn, wq) + bq).reshape(B, S, H, DH).transpose(0, 2, 1, 3)
    k = (mm(xn, wk) + bk).reshape(B, S, H, DH).transpose(0, 2, 1, 3)
    v = (mm(xn, wv) + bv).reshape(B, S, H, DH).transpose(0, 2, 1, 3)
    sc = jnp.einsum("bhqd,bhkd->bhqk", q, k, precision=HI) / math.sqrt(DH)
    sc = jnp.where(mask[:, None, :, :] > 0, sc, -1e9)
    p = jax.nn.softmax(sc, axis=-1)
    attn = jnp.einsum("bhqk,bhkd->bhqd", p, v,
                      precision=HI).transpose(0, 2, 1, 3).reshape(B, S, D)
    x1 = x + (mm(attn, wo) + bo)
    xn2 = ln(x1, g2, be2)
    mlp = mm(jnp.maximum(mm(xn2, w1) + b1, 0.0), w2) + b2
    return x1 + mlp


# ------------------------------- main ---------------------------------------
if __name__ == "__main__":
    key = jax.random.PRNGKey(0)
    ks = jax.random.split(key, 16)

    def w(k, shape, fan_in):
        return jax.random.normal(k, shape, jnp.float32) / math.sqrt(fan_in)

    def small(k, shape):
        return 0.02 * jax.random.normal(k, shape, jnp.float32)

    params = (
        1.0 + 0.1 * jax.random.normal(ks[6], (1, D), jnp.float32),   # ln1 gamma
        small(ks[7], (1, D)),                                        # ln1 beta
        w(ks[0], (D, D), D), small(ks[8], (1, D)),                   # Wq, bq
        w(ks[1], (D, D), D), small(ks[9], (1, D)),                   # Wk, bk
        w(ks[2], (D, D), D), small(ks[10], (1, D)),                  # Wv, bv
        w(ks[3], (D, D), D), small(ks[11], (1, D)),                  # Wo, bo
        1.0 + 0.1 * jax.random.normal(ks[12], (1, D), jnp.float32),  # ln2 gamma
        small(ks[13], (1, D)),                                       # ln2 beta
        w(ks[4], (D, DFF), D), small(ks[14], (1, DFF)),              # W1, b1
        w(ks[5], (DFF, D), DFF), small(ks[15], (1, D)),              # W2, b2
    )

    x = jax.random.normal(ks[6], (B, S, D), jnp.float32)
    # causal-ish mask just to exercise masking; 1 = attend
    mask = jnp.tile(jnp.tril(jnp.ones((S, S), jnp.float32))[None], (B, 1, 1))

    out = jax.block_until_ready(encoder_layer(x, mask, params))
    ref = encoder_layer_ref(x, mask, params)

    assert out.shape == (B, S, D)
    err = float(jnp.max(jnp.abs(out - ref)))
    # both sides run exact f32 matmuls (precision=HIGHEST) and an exact softmax
    # divide, so the tolerance can be tight
    assert jnp.allclose(out, ref, atol=1e-4, rtol=1e-4), err

    print("KERNEL_OK")
</pallas_src>

<mosaic_0001>
module attributes {stable_mosaic.version = 11 : i64} {
  func.func @encoder_layer_kernel(%arg0: i32, %arg1: memref<1x8x32xf32, #tpu.memory_space<vmem>>, %arg2: memref<1x8x8xf32, #tpu.memory_space<vmem>>, %arg3: memref<6x32xf32, #tpu.memory_space<vmem>>, %arg4: memref<32x96xf32, #tpu.memory_space<vmem>>, %arg5: memref<1x96xf32, #tpu.memory_space<vmem>>, %arg6: memref<32x32xf32, #tpu.memory_space<vmem>>, %arg7: memref<32x64xf32, #tpu.memory_space<vmem>>, %arg8: memref<1x64xf32, #tpu.memory_space<vmem>>, %arg9: memref<64x32xf32, #tpu.memory_space<vmem>>, %arg10: memref<1x8x32xf32, #tpu.memory_space<vmem>>) attributes {dimension_semantics = [#tpu.dimension_semantics<parallel>], iteration_bounds = array<i64: 2>, scalar_prefetch = 0 : i64, scratch_operands = 0 : i64, tpu.core_type = #tpu.core_type<tc>, window_params = [{transform_indices = @transform_0, window_bounds = array<i64: 1, 8, 32>}, {transform_indices = @transform_1, window_bounds = array<i64: 1, 8, 8>}, {pipeline_mode = #tpu.pipeline_mode<synchronous>, transform_indices = @transform_2, window_bounds = array<i64: 6, 32>}, {pipeline_mode = #tpu.pipeline_mode<synchronous>, transform_indices = @transform_3, window_bounds = array<i64: 32, 96>}, {pipeline_mode = #tpu.pipeline_mode<synchronous>, transform_indices = @transform_4, window_bounds = array<i64: 1, 96>}, {pipeline_mode = #tpu.pipeline_mode<synchronous>, transform_indices = @transform_5, window_bounds = array<i64: 32, 32>}, {pipeline_mode = #tpu.pipeline_mode<synchronous>, transform_indices = @transform_6, window_bounds = array<i64: 32, 64>}, {pipeline_mode = #tpu.pipeline_mode<synchronous>, transform_indices = @transform_7, window_bounds = array<i64: 1, 64>}, {pipeline_mode = #tpu.pipeline_mode<synchronous>, transform_indices = @transform_8, window_bounds = array<i64: 64, 32>}, {transform_indices = @transform_9, window_bounds = array<i64: 1, 8, 32>}]} {
    %c0 = arith.constant 0 : index
    %c0_0 = arith.constant 0 : index
    %c0_1 = arith.constant 0 : index
    %0 = vector.load %arg1[%c0, %c0_0, %c0_1] : memref<1x8x32xf32, #tpu.memory_space<vmem>>, vector<1x8x32xf32>
    %1 = vector.shape_cast %0 : vector<1x8x32xf32> to vector<8x32xf32>
    %c0_2 = arith.constant 0 : index
    %c0_3 = arith.constant 0 : index
    %c0_4 = arith.constant 0 : index
    %2 = vector.load %arg2[%c0_2, %c0_3, %c0_4] : memref<1x8x8xf32, #tpu.memory_space<vmem>>, vector<1x8x8xf32>
    %3 = vector.shape_cast %2 : vector<1x8x8xf32> to vector<8x8xf32>
    %c0_5 = arith.constant 0 : index
    %c0_6 = arith.constant 0 : index
    %4 = vector.load %arg3[%c0_5, %c0_6] : memref<6x32xf32, #tpu.memory_space<vmem>>, vector<1x32xf32>
    %c1 = arith.constant 1 : index
    %c0_7 = arith.constant 0 : index
    %5 = vector.load %arg3[%c1, %c0_7] : memref<6x32xf32, #tpu.memory_space<vmem>>, vector<1x32xf32>
    %c2 = arith.constant 2 : index
    %c0_8 = arith.constant 0 : index
    %6 = vector.load %arg3[%c2, %c0_8] : memref<6x32xf32, #tpu.memory_space<vmem>>, vector<1x32xf32>
    %c3 = arith.constant 3 : index
    %c0_9 = arith.constant 0 : index
    %7 = vector.load %arg3[%c3, %c0_9] : memref<6x32xf32, #tpu.memory_space<vmem>>, vector<1x32xf32>
    %c4 = arith.constant 4 : index
    %c0_10 = arith.constant 0 : index
    %8 = vector.load %arg3[%c4, %c0_10] : memref<6x32xf32, #tpu.memory_space<vmem>>, vector<1x32xf32>
    %c5 = arith.constant 5 : index
    %c0_11 = arith.constant 0 : index
    %9 = vector.load %arg3[%c5, %c0_11] : memref<6x32xf32, #tpu.memory_space<vmem>>, vector<1x32xf32>
    %cst = arith.constant dense<0.000000e+00> : vector<8xf32>
    %10 = vector.multi_reduction <add>, %1, %cst [1] : vector<8x32xf32> to vector<8xf32>
    %11 = vector.shape_cast %10 : vector<8xf32> to vector<8x1xf32>
    %cst_12 = arith.constant 3.200000e+01 : f32
    %12 = vector.broadcast %cst_12 : f32 to vector<8x1xf32>
    %13 = arith.divf %11, %12 : vector<8x1xf32>
    %14 = vector.broadcast %13 : vector<8x1xf32> to vector<8x32xf32>
    %15 = arith.subf %1, %14 : vector<8x32xf32>
    %16 = arith.mulf %15, %15 : vector<8x32xf32>
    %cst_13 = arith.constant dense<0.000000e+00> : vector<8xf32>
    %17 = vector.multi_reduction <add>, %16, %cst_13 [1] : vector<8x32xf32> to vector<8xf32>
    %18 = vector.shape_cast %17 : vector<8xf32> to vector<8x1xf32>
    %cst_14 = arith.constant 3.200000e+01 : f32
    %19 = vector.broadcast %cst_14 : f32 to vector<8x1xf32>
    %20 = arith.divf %18, %19 : vector<8x1xf32>
    %cst_15 = arith.constant 9.99999997E-7 : f32
    %21 = vector.broadcast %cst_15 : f32 to vector<8x1xf32>
    %22 = arith.addf %20, %21 : vector<8x1xf32>
    %23 = math.rsqrt %22 : vector<8x1xf32>
    %24 = vector.broadcast %23 : vector<8x1xf32> to vector<8x32xf32>
    %25 = arith.mulf %15, %24 : vector<8x32xf32>
    %26 = vector.broadcast %4 : vector<1x32xf32> to vector<8x32xf32>
    %27 = arith.mulf %25, %26 : vector<8x32xf32>
    %28 = vector.broadcast %5 : vector<1x32xf32> to vector<8x32xf32>
    %29 = arith.addf %27, %28 : vector<8x32xf32>
    %c0_16 = arith.constant 0 : index
    %c0_17 = arith.constant 0 : index
    %30 = vector.load %arg4[%c0_16, %c0_17] : memref<32x96xf32, #tpu.memory_space<vmem>>, vector<32x96xf32>
    %cst_18 = arith.constant dense<0.000000e+00> : vector<8x96xf32>
    %31 = tpu.matmul %29, %30, %cst_18 {dimension_numbers = #tpu.dot_dimension_numbers<[1], [0], [0], [1], [0, 0, 1, 1], [], []>, precision = #tpu.contract_precision<fp32>} : vector<8x32xf32>, vector<32x96xf32>, vector<8x96xf32> -> vector<8x96xf32>
    %c0_19 = arith.constant 0 : index
    %c0_20 = arith.constant 0 : index
    %32 = vector.load %arg5[%c0_19, %c0_20] : memref<1x96xf32, #tpu.memory_space<vmem>>, vector<1x96xf32>
    %33 = vector.broadcast %32 : vector<1x96xf32> to vector<8x96xf32>
    %34 = arith.addf %31, %33 : vector<8x96xf32>
    %35 = vector.extract_strided_slice %34 {offsets = [0, 0], sizes = [8, 8], strides = [1, 1]} : vector<8x96xf32> to vector<8x8xf32>
    %36 = vector.extract_strided_slice %34 {offsets = [0, 32], sizes = [8, 8], strides = [1, 1]} : vector<8x96xf32> to vector<8x8xf32>
    %37 = vector.extract_strided_slice %34 {offsets = [0, 64], sizes = [8, 8], strides = [1, 1]} : vector<8x96xf32> to vector<8x8xf32>
    %cst_21 = arith.constant dense<0.000000e+00> : vector<8x8xf32>
    %38 = tpu.matmul %35, %36, %cst_21 {dimension_numbers = #tpu.dot_dimension_numbers<[1], [1], [0], [0], [0, 0, 1, 0], [], []>, precision = #tpu.contract_precision<fp32>} : vector<8x8xf32>, vector<8x8xf32>, vector<8x8xf32> -> vector<8x8xf32>
    %39 = arith.addf %38, %3 : vector<8x8xf32>
    %cst_22 = arith.constant dense<0xFF800000> : vector<8xf32>
    %40 = vector.multi_reduction <maximumf>, %39, %cst_22 [1] : vector<8x8xf32> to vector<8xf32>
    %41 = vector.shape_cast %40 : vector<8xf32> to vector<8x1xf32>
    %42 = vector.broadcast %41 : vector<8x1xf32> to vector<8x8xf32>
    %43 = arith.subf %39, %42 : vector<8x8xf32>
    %44 = math.exp %43 : vector<8x8xf32>
    %cst_23 = arith.constant dense<0.000000e+00> : vector<8xf32>
    %45 = vector.multi_reduction <add>, %44, %cst_23 [1] : vector<8x8xf32> to vector<8xf32>
    %46 = vector.shape_cast %45 : vector<8xf32> to vector<8x1xf32>
    %47 = vector.broadcast %46 : vector<8x1xf32> to vector<8x8xf32>
    %48 = arith.divf %44, %47 : vector<8x8xf32>
    %cst_24 = arith.constant dense<0.000000e+00> : vector<8x8xf32>
    %49 = tpu.matmul %48, %37, %cst_24 {dimension_numbers = #tpu.dot_dimension_numbers<[1], [0], [0], [1], [0, 0, 1, 1], [], []>, precision = #tpu.contract_precision<fp32>} : vector<8x8xf32>, vector<8x8xf32>, vector<8x8xf32> -> vector<8x8xf32>
    %c0_25 = arith.constant 0 : index
    %c0_26 = arith.constant 0 : index
    %50 = vector.load %arg6[%c0_25, %c0_26] : memref<32x32xf32, #tpu.memory_space<vmem>>, vector<8x32xf32>
    %cst_27 = arith.constant dense<0.000000e+00> : vector<8x32xf32>
    %51 = tpu.matmul %49, %50, %cst_27 {dimension_numbers = #tpu.dot_dimension_numbers<[1], [0], [0], [1], [0, 0, 1, 1], [], []>, precision = #tpu.contract_precision<fp32>} : vector<8x8xf32>, vector<8x32xf32>, vector<8x32xf32> -> vector<8x32xf32>
    %52 = vector.extract_strided_slice %34 {offsets = [0, 8], sizes = [8, 8], strides = [1, 1]} : vector<8x96xf32> to vector<8x8xf32>
    %53 = vector.extract_strided_slice %34 {offsets = [0, 40], sizes = [8, 8], strides = [1, 1]} : vector<8x96xf32> to vector<8x8xf32>
    %54 = vector.extract_strided_slice %34 {offsets = [0, 72], sizes = [8, 8], strides = [1, 1]} : vector<8x96xf32> to vector<8x8xf32>
    %cst_28 = arith.constant dense<0.000000e+00> : vector<8x8xf32>
    %55 = tpu.matmul %52, %53, %cst_28 {dimension_numbers = #tpu.dot_dimension_numbers<[1], [1], [0], [0], [0, 0, 1, 0], [], []>, precision = #tpu.contract_precision<fp32>} : vector<8x8xf32>, vector<8x8xf32>, vector<8x8xf32> -> vector<8x8xf32>
    %56 = arith.addf %55, %3 : vector<8x8xf32>
    %cst_29 = arith.constant dense<0xFF800000> : vector<8xf32>
    %57 = vector.multi_reduction <maximumf>, %56, %cst_29 [1] : vector<8x8xf32> to vector<8xf32>
    %58 = vector.shape_cast %57 : vector<8xf32> to vector<8x1xf32>
    %59 = vector.broadcast %58 : vector<8x1xf32> to vector<8x8xf32>
    %60 = arith.subf %56, %59 : vector<8x8xf32>
    %61 = math.exp %60 : vector<8x8xf32>
    %cst_30 = arith.constant dense<0.000000e+00> : vector<8xf32>
    %62 = vector.multi_reduction <add>, %61, %cst_30 [1] : vector<8x8xf32> to vector<8xf32>
    %63 = vector.shape_cast %62 : vector<8xf32> to vector<8x1xf32>
    %64 = vector.broadcast %63 : vector<8x1xf32> to vector<8x8xf32>
    %65 = arith.divf %61, %64 : vector<8x8xf32>
    %cst_31 = arith.constant dense<0.000000e+00> : vector<8x8xf32>
    %66 = tpu.matmul %65, %54, %cst_31 {dimension_numbers = #tpu.dot_dimension_numbers<[1], [0], [0], [1], [0, 0, 1, 1], [], []>, precision = #tpu.contract_precision<fp32>} : vector<8x8xf32>, vector<8x8xf32>, vector<8x8xf32> -> vector<8x8xf32>
    %c8 = arith.constant 8 : index
    %c0_32 = arith.constant 0 : index
    %67 = vector.load %arg6[%c8, %c0_32] : memref<32x32xf32, #tpu.memory_space<vmem>>, vector<8x32xf32>
    %cst_33 = arith.constant dense<0.000000e+00> : vector<8x32xf32>
    %68 = tpu.matmul %66, %67, %cst_33 {dimension_numbers = #tpu.dot_dimension_numbers<[1], [0], [0], [1], [0, 0, 1, 1], [], []>, precision = #tpu.contract_precision<fp32>} : vector<8x8xf32>, vector<8x32xf32>, vector<8x32xf32> -> vector<8x32xf32>
    %69 = arith.addf %51, %68 : vector<8x32xf32>
    %70 = vector.extract_strided_slice %34 {offsets = [0, 16], sizes = [8, 8], strides = [1, 1]} : vector<8x96xf32> to vector<8x8xf32>
    %71 = vector.extract_strided_slice %34 {offsets = [0, 48], sizes = [8, 8], strides = [1, 1]} : vector<8x96xf32> to vector<8x8xf32>
    %72 = vector.extract_strided_slice %34 {offsets = [0, 80], sizes = [8, 8], strides = [1, 1]} : vector<8x96xf32> to vector<8x8xf32>
    %cst_34 = arith.constant dense<0.000000e+00> : vector<8x8xf32>
    %73 = tpu.matmul %70, %71, %cst_34 {dimension_numbers = #tpu.dot_dimension_numbers<[1], [1], [0], [0], [0, 0, 1, 0], [], []>, precision = #tpu.contract_precision<fp32>} : vector<8x8xf32>, vector<8x8xf32>, vector<8x8xf32> -> vector<8x8xf32>
    %74 = arith.addf %73, %3 : vector<8x8xf32>
    %cst_35 = arith.constant dense<0xFF800000> : vector<8xf32>
    %75 = vector.multi_reduction <maximumf>, %74, %cst_35 [1] : vector<8x8xf32> to vector<8xf32>
    %76 = vector.shape_cast %75 : vector<8xf32> to vector<8x1xf32>
    %77 = vector.broadcast %76 : vector<8x1xf32> to vector<8x8xf32>
    %78 = arith.subf %74, %77 : vector<8x8xf32>
    %79 = math.exp %78 : vector<8x8xf32>
    %cst_36 = arith.constant dense<0.000000e+00> : vector<8xf32>
    %80 = vector.multi_reduction <add>, %79, %cst_36 [1] : vector<8x8xf32> to vector<8xf32>
    %81 = vector.shape_cast %80 : vector<8xf32> to vector<8x1xf32>
    %82 = vector.broadcast %81 : vector<8x1xf32> to vector<8x8xf32>
    %83 = arith.divf %79, %82 : vector<8x8xf32>
    %cst_37 = arith.constant dense<0.000000e+00> : vector<8x8xf32>
    %84 = tpu.matmul %83, %72, %cst_37 {dimension_numbers = #tpu.dot_dimension_numbers<[1], [0], [0], [1], [0, 0, 1, 1], [], []>, precision = #tpu.contract_precision<fp32>} : vector<8x8xf32>, vector<8x8xf32>, vector<8x8xf32> -> vector<8x8xf32>
    %c16 = arith.constant 16 : index
    %c0_38 = arith.constant 0 : index
    %85 = vector.load %arg6[%c16, %c0_38] : memref<32x32xf32, #tpu.memory_space<vmem>>, vector<8x32xf32>
    %cst_39 = arith.constant dense<0.000000e+00> : vector<8x32xf32>
    %86 = tpu.matmul %84, %85, %cst_39 {dimension_numbers = #tpu.dot_dimension_numbers<[1], [0], [0], [1], [0, 0, 1, 1], [], []>, precision = #tpu.contract_precision<fp32>} : vector<8x8xf32>, vector<8x32xf32>, vector<8x32xf32> -> vector<8x32xf32>
    %87 = arith.addf %69, %86 : vector<8x32xf32>
    %88 = vector.extract_strided_slice %34 {offsets = [0, 24], sizes = [8, 8], strides = [1, 1]} : vector<8x96xf32> to vector<8x8xf32>
    %89 = vector.extract_strided_slice %34 {offsets = [0, 56], sizes = [8, 8], strides = [1, 1]} : vector<8x96xf32> to vector<8x8xf32>
    %90 = vector.extract_strided_slice %34 {offsets = [0, 88], sizes = [8, 8], strides = [1, 1]} : vector<8x96xf32> to vector<8x8xf32>
    %cst_40 = arith.constant dense<0.000000e+00> : vector<8x8xf32>
    %91 = tpu.matmul %88, %89, %cst_40 {dimension_numbers = #tpu.dot_dimension_numbers<[1], [1], [0], [0], [0, 0, 1, 0], [], []>, precision = #tpu.contract_precision<fp32>} : vector<8x8xf32>, vector<8x8xf32>, vector<8x8xf32> -> vector<8x8xf32>
    %92 = arith.addf %91, %3 : vector<8x8xf32>
    %cst_41 = arith.constant dense<0xFF800000> : vector<8xf32>
    %93 = vector.multi_reduction <maximumf>, %92, %cst_41 [1] : vector<8x8xf32> to vector<8xf32>
    %94 = vector.shape_cast %93 : vector<8xf32> to vector<8x1xf32>
    %95 = vector.broadcast %94 : vector<8x1xf32> to vector<8x8xf32>
    %96 = arith.subf %92, %95 : vector<8x8xf32>
    %97 = math.exp %96 : vector<8x8xf32>
    %cst_42 = arith.constant dense<0.000000e+00> : vector<8xf32>
    %98 = vector.multi_reduction <add>, %97, %cst_42 [1] : vector<8x8xf32> to vector<8xf32>
    %99 = vector.shape_cast %98 : vector<8xf32> to vector<8x1xf32>
    %100 = vector.broadcast %99 : vector<8x1xf32> to vector<8x8xf32>
    %101 = arith.divf %97, %100 : vector<8x8xf32>
    %cst_43 = arith.constant dense<0.000000e+00> : vector<8x8xf32>
    %102 = tpu.matmul %101, %90, %cst_43 {dimension_numbers = #tpu.dot_dimension_numbers<[1], [0], [0], [1], [0, 0, 1, 1], [], []>, precision = #tpu.contract_precision<fp32>} : vector<8x8xf32>, vector<8x8xf32>, vector<8x8xf32> -> vector<8x8xf32>
    %c24 = arith.constant 24 : index
    %c0_44 = arith.constant 0 : index
    %103 = vector.load %arg6[%c24, %c0_44] : memref<32x32xf32, #tpu.memory_space<vmem>>, vector<8x32xf32>
    %cst_45 = arith.constant dense<0.000000e+00> : vector<8x32xf32>
    %104 = tpu.matmul %102, %103, %cst_45 {dimension_numbers = #tpu.dot_dimension_numbers<[1], [0], [0], [1], [0, 0, 1, 1], [], []>, precision = #tpu.contract_precision<fp32>} : vector<8x8xf32>, vector<8x32xf32>, vector<8x32xf32> -> vector<8x32xf32>
    %105 = arith.addf %87, %104 : vector<8x32xf32>
    %106 = arith.addf %1, %105 : vector<8x32xf32>
    %107 = vector.broadcast %8 : vector<1x32xf32> to vector<8x32xf32>
    %108 = arith.addf %106, %107 : vector<8x32xf32>
    %cst_46 = arith.constant dense<0.000000e+00> : vector<8xf32>
    %109 = vector.multi_reduction <add>, %108, %cst_46 [1] : vector<8x32xf32> to vector<8xf32>
    %110 = vector.shape_cast %109 : vector<8xf32> to vector<8x1xf32>
    %cst_47 = arith.constant 3.200000e+01 : f32
    %111 = vector.broadcast %cst_47 : f32 to vector<8x1xf32>
    %112 = arith.divf %110, %111 : vector<8x1xf32>
    %113 = vector.broadcast %112 : vector<8x1xf32> to vector<8x32xf32>
    %114 = arith.subf %108, %113 : vector<8x32xf32>
    %115 = arith.mulf %114, %114 : vector<8x32xf32>
    %cst_48 = arith.constant dense<0.000000e+00> : vector<8xf32>
    %116 = vector.multi_reduction <add>, %115, %cst_48 [1] : vector<8x32xf32> to vector<8xf32>
    %117 = vector.shape_cast %116 : vector<8xf32> to vector<8x1xf32>
    %cst_49 = arith.constant 3.200000e+01 : f32
    %118 = vector.broadcast %cst_49 : f32 to vector<8x1xf32>
    %119 = arith.divf %117, %118 : vector<8x1xf32>
    %cst_50 = arith.constant 9.99999997E-7 : f32
    %120 = vector.broadcast %cst_50 : f32 to vector<8x1xf32>
    %121 = arith.addf %119, %120 : vector<8x1xf32>
    %122 = math.rsqrt %121 : vector<8x1xf32>
    %123 = vector.broadcast %122 : vector<8x1xf32> to vector<8x32xf32>
    %124 = arith.mulf %114, %123 : vector<8x32xf32>
    %125 = vector.broadcast %6 : vector<1x32xf32> to vector<8x32xf32>
    %126 = arith.mulf %124, %125 : vector<8x32xf32>
    %127 = vector.broadcast %7 : vector<1x32xf32> to vector<8x32xf32>
    %128 = arith.addf %126, %127 : vector<8x32xf32>
    %c0_51 = arith.constant 0 : index
    %c0_52 = arith.constant 0 : index
    %129 = vector.load %arg7[%c0_51, %c0_52] : memref<32x64xf32, #tpu.memory_space<vmem>>, vector<32x64xf32>
    %cst_53 = arith.constant dense<0.000000e+00> : vector<8x64xf32>
    %130 = tpu.matmul %128, %129, %cst_53 {dimension_numbers = #tpu.dot_dimension_numbers<[1], [0], [0], [1], [0, 0, 1, 1], [], []>, precision = #tpu.contract_precision<fp32>} : vector<8x32xf32>, vector<32x64xf32>, vector<8x64xf32> -> vector<8x64xf32>
    %c0_54 = arith.constant 0 : index
    %c0_55 = arith.constant 0 : index
    %131 = vector.load %arg8[%c0_54, %c0_55] : memref<1x64xf32, #tpu.memory_space<vmem>>, vector<1x64xf32>
    %132 = vector.broadcast %131 : vector<1x64xf32> to vector<8x64xf32>
    %133 = arith.addf %130, %132 : vector<8x64xf32>
    %cst_56 = arith.constant 0.000000e+00 : f32
    %134 = vector.broadcast %cst_56 : f32 to vector<8x64xf32>
    %135 = arith.maximumf %133, %134 : vector<8x64xf32>
    %c0_57 = arith.constant 0 : index
    %c0_58 = arith.constant 0 : index
    %136 = vector.load %arg9[%c0_57, %c0_58] : memref<64x32xf32, #tpu.memory_space<vmem>>, vector<64x32xf32>
    %cst_59 = arith.constant dense<0.000000e+00> : vector<8x32xf32>
    %137 = tpu.matmul %135, %136, %cst_59 {dimension_numbers = #tpu.dot_dimension_numbers<[1], [0], [0], [1], [0, 0, 1, 1], [], []>, precision = #tpu.contract_precision<fp32>} : vector<8x64xf32>, vector<64x32xf32>, vector<8x32xf32> -> vector<8x32xf32>
    %138 = vector.broadcast %9 : vector<1x32xf32> to vector<8x32xf32>
    %139 = arith.addf %137, %138 : vector<8x32xf32>
    %140 = arith.addf %108, %139 : vector<8x32xf32>
    %c0_60 = arith.constant 0 : index
    %c0_61 = arith.constant 0 : index
    %c0_62 = arith.constant 0 : index
    %141 = vector.load %arg10[%c0_60, %c0_61, %c0_62] : memref<1x8x32xf32, #tpu.memory_space<vmem>>, vector<1x8x32xf32>
    %142 = vector.shape_cast %141 : vector<1x8x32xf32> to vector<8x32xf32>
    %143 = vector.shape_cast %140 : vector<8x32xf32> to vector<1x8x32xf32>
    tpu.vector_store %arg10[%c0_60, %c0_61, %c0_62], %143 {strides = array<i32>} : memref<1x8x32xf32, #tpu.memory_space<vmem>>, vector<1x8x32xf32>,
    return
  }
  func.func @transform_0(%arg0: i32) -> (i32, i32, i32) {
    %c0_i32 = arith.constant 0 : i32
    %c0_i32_0 = arith.constant 0 : i32
    %c0_i32_1 = arith.constant 0 : i32
    return %arg0, %c0_i32, %c0_i32_0 : i32, i32, i32
  }
  func.func @transform_1(%arg0: i32) -> (i32, i32, i32) {
    %c0_i32 = arith.constant 0 : i32
    %c0_i32_0 = arith.constant 0 : i32
    %c0_i32_1 = arith.constant 0 : i32
    return %arg0, %c0_i32, %c0_i32_0 : i32, i32, i32
  }
  func.func @transform_2(%arg0: i32) -> (i32, i32) {
    %c0_i32 = arith.constant 0 : i32
    %c0_i32_0 = arith.constant 0 : i32
    %c0_i32_1 = arith.constant 0 : i32
    return %c0_i32, %c0_i32_0 : i32, i32
  }
  func.func @transform_3(%arg0: i32) -> (i32, i32) {
    %c0_i32 = arith.constant 0 : i32
    %c0_i32_0 = arith.constant 0 : i32
    %c0_i32_1 = arith.constant 0 : i32
    return %c0_i32, %c0_i32_0 : i32, i32
  }
  func.func @transform_4(%arg0: i32) -> (i32, i32) {
    %c0_i32 = arith.constant 0 : i32
    %c0_i32_0 = arith.constant 0 : i32
    %c0_i32_1 = arith.constant 0 : i32
    return %c0_i32, %c0_i32_0 : i32, i32
  }
  func.func @transform_5(%arg0: i32) -> (i32, i32) {
    %c0_i32 = arith.constant 0 : i32
    %c0_i32_0 = arith.constant 0 : i32
    %c0_i32_1 = arith.constant 0 : i32
    return %c0_i32, %c0_i32_0 : i32, i32
  }
  func.func @transform_6(%arg0: i32) -> (i32, i32) {
    %c0_i32 = arith.constant 0 : i32
    %c0_i32_0 = arith.constant 0 : i32
    %c0_i32_1 = arith.constant 0 : i32
    return %c0_i32, %c0_i32_0 : i32, i32
  }
  func.func @transform_7(%arg0: i32) -> (i32, i32) {
    %c0_i32 = arith.constant 0 : i32
    %c0_i32_0 = arith.constant 0 : i32
    %c0_i32_1 = arith.constant 0 : i32
    return %c0_i32, %c0_i32_0 : i32, i32
  }
  func.func @transform_8(%arg0: i32) -> (i32, i32) {
    %c0_i32 = arith.constant 0 : i32
    %c0_i32_0 = arith.constant 0 : i32
    %c0_i32_1 = arith.constant 0 : i32
    return %c0_i32, %c0_i32_0 : i32, i32
  }
  func.func @transform_9(%arg0: i32) -> (i32, i32, i32) {
    %c0_i32 = arith.constant 0 : i32
    %c0_i32_0 = arith.constant 0 : i32
    %c0_i32_1 = arith.constant 0 : i32
    return %arg0, %c0_i32, %c0_i32_0 : i32, i32, i32
  }
}

</mosaic_0001>

<bundles_post_ra>
// kernel: encoder_layer.1
= control target key start
LH: loop header
LB: loop body
LE: loop exit
PB: predicated region body
PF: predicated region fallthrough
CT: control target
= control target key end

     0   :  { %14 = vsyncpa [#allocation3], 0  ;;  %s9603_s0 = inlined_call_operand.hbm [shape: f32[2,8,32], index: 0, kind: input, shape index: {}, may-alias: {0,9}]   ;;  %s9604_s1 = inlined_call_operand.vmem [shape: f32[2,8,8], index: 1, kind: input, shape index: {}]   ;;  %s9605_s2 = inlined_call_operand.vmem [shape: f32[6,32], index: 2, kind: input, shape index: {}]   ;;  %s9606_s3 = inlined_call_operand.vmem [shape: f32[32,96], index: 3, kind: input, shape index: {}]   ;;  %s9607_s4 = inlined_call_operand.vmem [shape: f32[1,96], index: 4, kind: input, shape index: {}]   ;;  %s9608_s5 = inlined_call_operand.vmem [shape: f32[32,32], index: 5, kind: input, shape index: {}]   ;;  %s9609_s6 = inlined_call_operand.vmem [shape: f32[32,64], index: 6, kind: input, shape index: {}]   ;;  %s9610_s7 = inlined_call_operand.vmem [shape: f32[1,64], index: 7, kind: input, shape index: {}]   ;;  %s9611_s8 = inlined_call_operand.vmem [shape: f32[64,32], index: 8, kind: input, shape index: {}]   ;;  %s9612_s9 = inlined_call_operand.hbm [shape: f32[2,8,32], index: 9, kind: output, shape index: {}, may-alias: {0,9}]  }
   0x1   :  { %16 = vsyncpa [#allocation3 + $0x1], 0 }
   0x2   :  { %17 = vsyncpa [#allocation4], 0 }
   0x3   :  { %19 = vsyncpa [#allocation4 + $0x1], 0  ;;  %s8672_s30 = smov 0   ;;  %s8674_s10 = smov 0  }
   0x4   :  { %s8676_s11 = smov 0   ;;  %s8678_s12 = smov 0  }
   0x5 LB: > { %9616 = sst [smem:[#allocation8_spill]] %s8601_s11  ;;  %s8693_s13 = sadd.s32 4294967295, %s8605_s12   ;;  %s8605_s12 = sphi %s8678_s12, %s9633_s12   ;;  %s8601_s11 = sphi %s8676_s11, %s9630_s11   ;;  %s8597_s10 = sphi %s8674_s10, %s9632_s10   ;;  %s8593_s30 = sphi %s8672_s30, %s9631_s30  }
   0x6   : > { %s7547_s14 = sadd.s32 4294967294, %s8605_s12   ;;  %s8697_s15 = sadd.s32 1, %s8605_s12  }
   0x7   : > { %s32_s16 = sadd.s32 1, %s8601_s11  ;;  %s29_s17 = ssub.s32 %s8605_s12, %s8697_s15 }
   0x8   : > { %p39_p0 = scmp.ne.s32.totalorder %s8601_s11, %s8597_s10  ;;  %p30_p1 = scmp.eq.s32.totalorder %s29_s17, 0 }
   0x9   : > { %p40_p2 = scmp.eq.s32.totalorder %s8605_s12, 0  ;;  %p45_p3 = scmp.ne.s32.totalorder %s8597_s10, %s8593_s30 }
   0xa   : > { %p46_p4 = scmp.eq.s32.totalorder %s8693_s13, 0  ;;  %p242_p7 = scmp.eq.s32.totalorder %s8693_s13, 1 }
   0xb   : > { %s8709_s18 = scalar_select %p30_p1, %s8601_s11, %s32_s16  }
   0xc   : > { %p8711_p5 = por %p40_p2, %p39_p0  ;;  %p8715_p6 = por %p46_p4, %p45_p3 }
   0xd   : > { %9617 = sst [smem:[#allocation9_spill]] %s8709_s18  ;;  %p248_p8 = scmp.eq.s32.totalorder %s7547_s14, 1 }
   0xe   : > { %s9619_s20 = scalar_select %p8715_p6, 1, 0 }
   0xf   : > { %p8444_p10 = scmp.lt.s32.totalorder %s8605_s12, 2  ;;  %p8722_p11 = por %p242_p7, %p39_p0 }
  0x10   : > { %p8726_p12 = por %p248_p8, %p45_p3  ;;  %s289_s23 = sand.u32 1, %s8601_s11  }
  0x11   : > { %s9620_s21 = scalar_select %p8722_p11, 1, 0 }
  0x12   : > { %s9621_s22 = scalar_select %p8726_p12, 1, 0 }
  0x13   : > { %s7551_s24 = sshll.u32 %s8605_s12, 7  ;;  %s7550_s25 = sshll.u32 %s289_s23, 3 }
  0x14   : > { %s8735_s28 = scalar_lea.hbm %s9603_s0, %s7551_s24  ;;  %s293_s29 = scalar_lea.vmem [#allocation2], %s7550_s25 }
  0x15   : > { %s300_s14 = sshll.u32 %s293_s29, 4  ;;  %p8739_p13 = pnand %p8444_p10, %p8711_p5  ;;  %s8743_s14 = int_to_ptr.vmem [resolvable:$true] %s300_s14 }
  0x16   : > { %s290_s17 = scalar_lea.sflag [#allocation3], %s289_s23  ;;  %s8513_s18 = scalar_lea.hbm %s8735_s28, 128 }
  0x17   : > { %p8514_p2 = scmp.ne.s32.totalorder %s8735_s28, %s8513_s18  ;;  %p8515_p3 = pneg %p8739_p13 }
  0x18   : > { %s8518_s19 = scalar_lea.hbm %s9603_s0, 256  ;;  %p8519_p5 = scmp.lt.s32.totalorder %s8735_s28, %s9603_s0 }
  0x19   : > { %p8516_p4 = pnand %p8515_p3, %p8514_p2  ;;  %p8520_p8 = scmp.lt.s32.totalorder %s8518_s19, %s8513_s18 }
  0x1b   : > { %p8517_p7 = pneg %p8516_p4  ;;  %p8521_p10 = por %p8520_p8, %p8519_p5 }
  0x1d   : > { %p8522_p9 = pnand %p8521_p10, %p8517_p7 }
  0x1f   : > { %8525 = shalt.err (!%p8522_p9)
}
  0x20   : > { %s8526_s23 = scalar_lea.vmem %s8743_s14, 128  ;;  %s8607_s29 = smov [#allocation2]  }
  0x21   : > { %p8527_p0 = scmp.ne.s32.totalorder %s8743_s14, %s8526_s23  ;;  %s8531_s11 = sshll.u32 %s8607_s29, 4  ;;  %s8532_s11 = int_to_ptr.vmem [resolvable:$false] %s8531_s11 }
  0x22   : > { %s8533_s24 = scalar_lea.vmem %s8532_s11, 256  ;;  %p8534_p4 = scmp.lt.s32.totalorder %s8743_s14, %s8532_s11 }
  0x23   : > { %p8529_p1 = pnand %p8527_p0, %p8515_p3  ;;  %p8535_p12 = scmp.lt.s32.totalorder %s8533_s24, %s8526_s23 }
  0x25   : > { %p8530_p2 = pneg %p8529_p1  ;;  %p8536_p11 = por %p8535_p12, %p8534_p4 }
  0x27   : > { %p8537_p6 = pnand %p8536_p11, %p8530_p2 }
  0x29   : > { %8540 = shalt.err (!%p8537_p6)
}
  0x2a   : > { %8439 = dma.hbm_to_vmem [thread:$0]  (!%p8739_p13), %s8735_s28, 128, %s8743_s14, %s290_s17  }
  0x2b   : > { %p9623_p9 = scmp.lt.s32.totalorder %s8605_s12, 3  ;;  %p9624_p7 = scmp.ge.s32.totalorder %s8605_s12, 1 }
  0x2d   : > { %p313_p0 = pnand %p9624_p7, %p9623_p9 }
  0x2e   : > { %s8770_s18 = sand.u32 (!%p313_p0), 1, %s8597_s10   ;;  %p9625_p6 = scmp.ne.s32.totalorder (!%p313_p0), %s9619_s20, 0 }
  0x2f   : > { %316 = sbr.rel (%p313_p0) target bundleno = 4527 (0x11af), region = 56  ;;  %s7553_s11 = sshll.u32 (!%p313_p0), %s8770_s18, 3 }
  0x30   : > { %s319_s25 = scalar_lea.sflag (!%p313_p0), [#allocation3], %s8770_s18  ;;  %s8776_s16 = scalar_lea.vmem (!%p313_p0), [#allocation2], %s7553_s11 }
  0x34   : > { %8584 = dma.done.wait (%p9625_p6), %s319_s25, 128  }
  0x35   : > { %8586 = vsyncadd (%p9625_p6), %s319_s25, 4294967168  ;;  %vm373_vm0 = vcmask 261120   ;;  %v365_v0 = vld [vmem:[%s8776_s16] sm:$0xff]  ;;  %v401_v7 = vld [vmem:[%s9606_s3 + $0x18] sm:$0xff]  ;;  %v8608_v10 = vmov 0.0   ;;  %vm8609_vm1 = vmmov 0  }
  0x36   : > { %v374_v1 = vsel %vm373_vm0, %v365_v0, 0.0  ;;  %v400_v8 = vld [vmem:[%s9606_s3 + $0x10] sm:$0xff]  ;;  %v399_v9 = vld [vmem:[%s9606_s3 + $0x8] sm:$0xff]  ;;  %7837 = vmatprep.subr.mxu1 %v8608_v10  ;;  %v8795_v11 = vand.u32 4294901760, %v401_v7  ;;  %v398_v14 = vld [vmem:[%s9606_s3] sm:$0xff]  ;;  %7826 = vmatprep.subr.mxu0 %v8608_v10  ;;  %s8610_s20 = smov 96  }
  0x37   : > { %375 = vadd.xlane.f32.xlu0 %v374_v1  ;;  %v8797_v12 = vand.u32 4294901760, %v400_v8  ;;  %v8799_v13 = vand.u32 4294901760, %v399_v9  ;;  %v8805_v15 = vand.u32 4294901760, %v398_v14  ;;  %7845 = vmatprep.mubr.msk.f32.mxu1 %vm8609_vm1, %v8608_v10  ;;  %v7556_v36 = vld [vmem:[%s9605_s2] ss:$0 sm:$0xff]  ;;  %vm900_vm2 = vcmask 64512  }
  0x38   : > { %7834 = vmatprep.mubr.msk.f32.mxu0 %vm8609_vm1, %v8608_v10  ;;  %v8812_v16 = vsub.f32 %v401_v7, %v8795_v11  ;;  %7827 = vmatpush3.msra.mxu0 %v8795_v11  ;;  %v7557_v38 = vld [vmem:[%s9605_s2 + $0x1] ss:$0 sm:$0xff]  ;;  %v7558_v53 = vld [vmem:[%s9607_s4] ss:$0 sm:$0xff]  ;;  %p361_p11 = scmp.lt.s32.totalorder %s8693_s13, 1  ;;  %s8611_s24 = smov 64  }
  0x39   : > { %v8815_v17 = vsub.f32 %v400_v8, %v8797_v12  ;;  %v8818_v18 = vsub.f32 %v399_v9, %v8799_v13  ;;  %v8822_v19 = vsub.f32 %v398_v14, %v8805_v15  ;;  %7828 = vmatprep.subr.mxu0 %v8608_v10  ;;  %s8612_s25 = smov 88   ;;  %s8613_s28 = smov 120   ;;  %vm6908_vm3 = vcmask 523264  }
  0x3a   : > { %v518_v20 = vand.u32 4294901760, %v8812_v16  ;;  %7829 = vmatpush3.msra.mxu0 %v8797_v12  ;;  %s362_s19 = scalar_select %p361_p11, %s8693_s13, 1 }
  0x3b   : > { %v525_v21 = vand.u32 4294901760, %v8815_v17  ;;  %v532_v22 = vand.u32 4294901760, %v8818_v18  ;;  %v539_v23 = vand.u32 4294901760, %v8822_v19  ;;  %7830 = vmatprep.subr.mxu0 %v8608_v10  ;;  %s8614_s14 = smov 56   ;;  %s8615_s17 = smov 80  }
  0x3c   : > { %v519_v24 = vsub.f32 %v8812_v16, %v518_v20  ;;  %7831 = vmatpush3.msra.mxu0 %v8799_v13  ;;  %s7555_s26 = sshll.u32 %s362_s19, 3  ;;  %s360_s19 = scalar_lea.vmem [#allocation5], %s7553_s11 }
  0x3d   : > { %v526_v25 = vsub.f32 %v8815_v17, %v525_v21  ;;  %v533_v26 = vsub.f32 %v8818_v18, %v532_v22  ;;  %7832 = vmatprep.subr.mxu0 %v8608_v10  ;;  %v540_v29 = vsub.f32 %v8822_v19, %v539_v23  ;;  %s8938_s29 = scalar_lea.vmem %s9604_s1, %s7555_s26  ;;  %s7465_s26 = sshll.u32 %s360_s19, 4  ;;  %s7466_s26 = int_to_ptr.vmem [resolvable:$true] %s7465_s26 }
  0x3e   : > { %v520_v27 = vand.u32 4294901760, %v519_v24  ;;  %7833 = vmatpush3.msra.mxu0 %v8805_v15  ;;  %p9626_p13 = scmp.ne.s32.totalorder %s9620_s21, 0 }
  0x3f   : > { %v527_v28 = vand.u32 4294901760, %v526_v25  ;;  %7848 = vmatprep.subr.mxu0 %v8608_v10  ;;  %v534_v30 = vand.u32 4294901760, %v533_v26  ;;  %v541_v31 = vand.u32 4294901760, %v540_v29 }
  0x40   : > { %7838 = vmatpush3.msra.mxu1 %v520_v27 }
  0x41   : > { %7839 = vmatprep.subr.mxu1 %v8608_v10 }
  0x42   : > { %7840 = vmatpush3.msra.mxu1 %v527_v28 }
  0x43   : > { %7841 = vmatprep.subr.mxu1 %v8608_v10 }
  0x44   : > { %7842 = vmatpush3.msra.mxu1 %v534_v30 }
  0x45   : > { %7843 = vmatprep.subr.mxu1 %v8608_v10 }
  0x46   : > { %7844 = vmatpush3.msra.mxu1 %v541_v31 }
  0x47   : > { %7859 = vmatprep.subr.mxu1 %v8608_v10 }
  0xc0   : > { %v376_v2 = vpop.xlane.xlu0 %375 }
  0xc1   : > { %v378_v3 = vmul.f32 0.03125, %v376_v2 }
  0xc3   : > { %v379_v4 = vsub.f32 %v365_v0, %v378_v3 }
  0xc5   : > { %v380_v5 = vmul.f32 %v379_v4, %v379_v4 }
  0xc7   : > { %v381_v6 = vsel %vm373_vm0, %v380_v5, 0.0 }
  0xc8   : > { %382 = vadd.xlane.f32.xlu0 %v381_v6 }
 0x151   : > { %v383_v32 = vpop.xlane.xlu0 %382 }
 0x152   : > { %v384_v33 = vmul.f32 0.03125, %v383_v32 }
 0x154   : > { %v385_v34 = vadd.f32 1e-06, %v384_v33 }
 0x156   : > { %8491 = vrsqrt.f32 %v385_v34 }
 0x163   : > { %v8492_v35 = vpop.eup %8491 }
 0x164   : > { %v387_v37 = vmul.f32 %v8492_v35, %v379_v4 }
 0x166   : > { %v392_v39 = vmul.f32 %v7556_v36, %v387_v37 }
 0x168   : > { %v397_v40 = vadd.f32 %v7557_v38, %v392_v39 }
 0x16a   : > { %v410_v41 = vsel %vm373_vm0, %v397_v40, 0 }
 0x16b   : > { %v481_v42 = vand.u32 4294901760, %v410_v41 }
 0x16d   : > { %v482_v43 = vsub.f32 %v410_v41, %v481_v42  ;;  %7846 = vmatmul.mubr.f32.vlgmr.msra.gmra.mxu1 %v481_v42 }
 0x16e   : > { %7860 = vmatpush3.msra.mxu1 %v8795_v11  ;;  %7867 = vmatprep.mubr.msk.f32.mxu1 %vm8609_vm1, %v8608_v10 }
 0x16f   : > { %7861 = vmatprep.subr.mxu1 %v8608_v10  ;;  %v483_v44 = vand.u32 4294901760, %v482_v43 }
 0x170   : > { %7862 = vmatpush3.msra.mxu1 %v8797_v12 }
 0x171   : > { %7863 = vmatprep.subr.mxu1 %v8608_v10  ;;  %v484_v45 = vsub.f32 %v482_v43, %v483_v44 }
 0x172   : > { %7864 = vmatpush3.msra.mxu1 %v8799_v13 }
 0x173   : > { %7865 = vmatprep.subr.mxu1 %v8608_v10  ;;  %v485_v46 = vand.u32 4294901760, %v484_v45 }
 0x174   : > { %7866 = vmatpush3.msra.mxu1 %v8805_v15 }
 0x175   : > { %7868 = vmatmul.mubr.f32.vlgmr.msra.gmra.mxu1 %v483_v44  ;;  %7881 = vmatprep.subr.mxu1 %v8608_v10 }
 0x176   : > { %7835 = vmatmul.mubr.f32.vlgmr.msra.gmra.mxu0 %v485_v46  ;;  %7882 = vmatpush3.msra.mxu1 %v8795_v11 }
 0x177   : > { %7849 = vmatpush3.msra.mxu0 %v8812_v16  ;;  %7883 = vmatprep.subr.mxu1 %v8608_v10 }
 0x178   : > { %7850 = vmatprep.subr.mxu0 %v8608_v10  ;;  %7884 = vmatpush3.msra.mxu1 %v8797_v12 }
 0x179   : > { %7851 = vmatpush3.msra.mxu0 %v8815_v17  ;;  %7885 = vmatprep.subr.mxu1 %v8608_v10 }
 0x17a   : > { %7852 = vmatprep.subr.mxu0 %v8608_v10  ;;  %7886 = vmatpush3.msra.mxu1 %v8799_v13 }
 0x17b   : > { %7853 = vmatpush3.msra.mxu0 %v8818_v18  ;;  %7887 = vmatprep.subr.mxu1 %v8608_v10  ;;  %v8941_v18 = vld [vmem:[%s8938_s29] sm:$0xff] }
 0x17c   : > { %7854 = vmatprep.subr.mxu0 %v8608_v10  ;;  %7856 = vmatprep.mubr.msk.f32.mxu0 %vm8609_vm1, %v8608_v10 }
 0x17d   : > { %7855 = vmatpush3.msra.mxu0 %v8822_v19  ;;  %7888 = vmatpush3.msra.mxu1 %v8805_v15 }
 0x17e   : > { %7889 = vmatprep.mubr.msk.f32.mxu1 %vm8609_vm1, %v8608_v10  ;;  %7857 = vmatmul.mubr.f32.vlgmr.msra.gmra.mxu0 %v482_v43 }
 0x17f   : > { %7870 = vmatprep.subr.mxu0 %v8608_v10  ;;  %7890 = vmatmul.mubr.f32.vlgmr.msra.gmra.mxu1 %v481_v42 }
 0x180   : > { %7871 = vmatpush3.msra.mxu0 %v518_v20  ;;  %7878 = vmatprep.mubr.msk.f32.mxu0 %vm8609_vm1, %v8608_v10 }
 0x181   : > { %7872 = vmatprep.subr.mxu0 %v8608_v10  ;;  %7897 = vmatprep.subr.mxu1 %v8608_v10 }
 0x182   : > { %7873 = vmatpush3.msra.mxu0 %v525_v21  ;;  %7899 = vmatprep.mubr.msk.f32.mxu1 %vm8609_vm1, %v8608_v10 }
 0x183   : > { %7874 = vmatprep.subr.mxu0 %v8608_v10 }
 0x184   : > { %7875 = vmatpush3.msra.mxu0 %v532_v22 }
 0x185   : > { %7876 = vmatprep.subr.mxu0 %v8608_v10 }
 0x186   : > { %7877 = vmatpush3.msra.mxu0 %v539_v23 }
 0x187   : > { %7879 = vmatmul.mubr.f32.vlgmr.msra.gmra.mxu0 %v481_v42  ;;  %7892 = vmatprep.subr.mxu0 %v8608_v10 }
 0x188   : > { %7894 = vmatprep.mubr.msk.f32.mxu0 %vm8609_vm1, %v8608_v10 }
 0x22d   : > { %v578_v47 = vpop.f32.mrf.mxu1 }
 0x22f   : > { %v7847_v48 = vpop.f32.mrf.mxu1 }
 0x235   : > { %v735_v49 = vpop.f32.mrf.mxu1 }
 0x236   : > { %v487_v50 = vpop.f32.mrf.mxu0 }
 0x237   : > { %v7869_v51 = vpop.f32.mrf.mxu1  ;;  %v488_v54 = vadd.f32 %v7558_v53, %v487_v50 }
 0x238   : > { %v7836_v52 = vpop.f32.mrf.mxu0 }
 0x239   : > { %v579_v57 = vadd.f32 %v578_v47, %v488_v54 }
 0x23e   : > { %v658_v55 = vpop.f32.mrf.mxu0 }
 0x23f   : > { %v893_v56 = vpop.f32.mrf.mxu1  ;;  %v659_v60 = vadd.f32 %v658_v55, %v579_v57 }
 0x240   : > { %v7858_v58 = vpop.f32.mrf.mxu0 }
 0x241   : > { %v7891_v59 = vpop.f32.mrf.mxu1  ;;  %v736_v61 = vadd.f32 %v735_v49, %v659_v60 }
 0x247   : > { %v818_v62 = vpop.f32.mrf.mxu0 }
 0x248   : > { %v819_v63 = vadd.f32 %v818_v62, %v736_v61 }
 0x249   : > { %v7880_v0 = vpop.f32.mrf.mxu0 }
 0x24a   : > { %v8909_v1 = vadd.f32 %v893_v56, %v819_v63 }
 0x24c   : > { %898 = vrot.lane.b32.xlu1 %v8909_v1, %s8610_s20  ;;  %v901_v2 = vsel %vm900_vm2, %v8909_v1, 0  ;;  %s8616_s20 = smov 112  }
 0x24d   : > { %v971_v3 = vand.u32 4294901760, %v901_v2 }
 0x24f   : > { %v972_v4 = vsub.f32 %v901_v2, %v971_v3 }
 0x251   : > { %v973_v5 = vand.u32 4294901760, %v972_v4 }
 0x253   : > { %v974_v8 = vsub.f32 %v972_v4, %v973_v5 }
 0x255   : > { %v975_v12 = vand.u32 4294901760, %v974_v8 }
 0x2be   : > { %v899_v6 = vpop.permute.xlu1 %898 }
 0x2bf   : > { %v903_v7 = vsel %vm900_vm2, %v899_v6, 0 }
 0x2c0   : > { %v936_v9 = vand.u32 4294901760, %v903_v7 }
 0x2c2   : > { %v1013_v11 = vsub.f32 %v903_v7, %v936_v9  ;;  %7893 = vmatpush3.xpose.msra.mxu0 %v936_v9 }
 0x2c3   : > { %7902 = vmatprep.subr.mxu0 %v8608_v10 }
 0x2c4   : > { %v1014_v13 = vand.u32 4294901760, %v1013_v11 }
 0x2c5   : > { %7895 = vmatmul.mubr.f32.vlgmr.msra.gmra.mxu0 %v975_v12 }
 0x2c6   : > { %v1015_v14 = vsub.f32 %v1013_v11, %v1014_v13  ;;  %7903 = vmatpush3.xpose.msra.mxu0 %v1013_v11  ;;  %7904 = vmatprep.mubr.msk.f32.mxu0 %vm8609_vm1, %v8608_v10 }
 0x2c7   : > { %7912 = vmatprep.subr.mxu0 %v8608_v10 }
 0x2c8   : > { %v1016_v15 = vand.u32 4294901760, %v1015_v14 }
 0x2c9   : > { %7905 = vmatmul.mubr.f32.vlgmr.msra.gmra.mxu0 %v972_v4 }
 0x2ca   : > { %7898 = vmatpush3.xpose.msra.mxu1 %v1016_v15  ;;  %7913 = vmatpush3.xpose.msra.mxu0 %v1014_v13 }
 0x2cb   : > { %7914 = vmatprep.mubr.msk.f32.mxu0 %vm8609_vm1, %v8608_v10  ;;  %7907 = vmatprep.subr.mxu1 %v8608_v10 }
 0x2cc   : > { %7922 = vmatprep.subr.mxu0 %v8608_v10 }
 0x2cd   : > { %7900 = vmatmul.mubr.f32.vlgmr.msra.gmra.mxu1 %v971_v3  ;;  %7915 = vmatmul.mubr.f32.vlgmr.msra.gmra.mxu0 %v971_v3 }
 0x2ce   : > { %7908 = vmatpush3.xpose.msra.mxu1 %v936_v9  ;;  %7909 = vmatprep.mubr.msk.f32.mxu1 %vm8609_vm1, %v8608_v10 }
 0x2cf   : > { %7917 = vmatprep.subr.mxu1 %v8608_v10  ;;  %7924 = vmatprep.mubr.msk.f32.mxu0 %vm8609_vm1, %v8608_v10 }
 0x2d1   : > { %7910 = vmatmul.mubr.f32.vlgmr.msra.gmra.mxu1 %v973_v5 }
 0x2d2   : > { %7918 = vmatpush3.xpose.msra.mxu1 %v936_v9  ;;  %7919 = vmatprep.mubr.msk.f32.mxu1 %vm8609_vm1, %v8608_v10 }
 0x2d3   : > { %7927 = vmatprep.subr.mxu1 %v8608_v10 }
 0x2d5   : > { %7920 = vmatmul.mubr.f32.vlgmr.msra.gmra.mxu1 %v971_v3 }
 0x2d6   : > { %7929 = vmatprep.mubr.msk.f32.mxu1 %vm8609_vm1, %v8608_v10 }
 0x385   : > { %v977_v16 = vpop.f32.mrf.mxu0 }
 0x386   : > { %v978_v21 = vadd.f32 %v977_v16, %v8941_v18 }
 0x387   : > { %v7896_v17 = vpop.f32.mrf.mxu0 }
 0x389   : > { %v1127_v19 = vpop.f32.mrf.mxu0 }
 0x38b   : > { %v7906_v20 = vpop.f32.mrf.mxu0 }
 0x38d   : > { %v1053_v22 = vpop.f32.mrf.mxu1  ;;  %v1275_v23 = vpop.f32.mrf.mxu0 }
 0x38e   : > { %v1054_v24 = vadd.f32 %v1053_v22, %v978_v21 }
 0x38f   : > { %v7901_v25 = vpop.f32.mrf.mxu1  ;;  %v7916_v26 = vpop.f32.mrf.mxu0 }
 0x390   : > { %v1128_v27 = vadd.f32 %v1127_v19, %v1054_v24 }
 0x391   : > { %v1201_v28 = vpop.f32.mrf.mxu1 }
 0x392   : > { %v1202_v29 = vadd.f32 %v1201_v28, %v1128_v27 }
 0x393   : > { %v7911_v30 = vpop.f32.mrf.mxu1 }
 0x394   : > { %v1276_v31 = vadd.f32 %v1275_v23, %v1202_v29 }
 0x395   : > { %v1347_v32 = vpop.f32.mrf.mxu1 }
 0x396   : > { %v1348_v33 = vadd.f32 %v1347_v32, %v1276_v31 }
 0x397   : > { %v7921_v34 = vpop.f32.mrf.mxu1 }
 0x398   : > { %v1351_v35 = vsel %vm900_vm2, %v1348_v33, -inf }
 0x399   : > { %1352 = vmax.xlane.f32.xlu1 %v1351_v35 }
 0x422   : > { %v1353_v36 = vpop.xlane.xlu1 %1352 }
 0x423   : > { %v1354_v37 = vsub.f32 %v1348_v33, %v1353_v36 }
 0x425   : > { %v1355_v38 = vmul.f32 1.442695, %v1354_v37 }
 0x427   : > { %8493 = vpow2.f32 %v1355_v38 }
 0x434   : > { %v8494_v39 = vpop.eup %8493 }
 0x435   : > { %v1357_v40 = vsel %vm900_vm2, %v8494_v39, 0.0 }
 0x436   : > { %1358 = vadd.xlane.f32.xlu0 %v1357_v40 }
 0x44c   : > { %1362 = vrot.lane.b32.xlu0 %v8909_v1, %s8611_s24  ;;  %s8617_s24 = smov 48  }
 0x450   : > { %1817 = vrot.lane.b32.xlu0 %v8909_v1, %s8612_s25  ;;  %s8618_s25 = smov 72  }
 0x454   : > { %1815 = vrot.lane.b32.xlu0 %v8909_v1, %s8613_s28  ;;  %s8619_s28 = smov 104  }
 0x4bf   : > { %v1359_v41 = vpop.xlane.xlu0 %1358 }
 0x4c0   : > { %8495 = vrcp.f32 %v1359_v41 }
 0x4c3   : > { %v1363_v42 = vpop.permute.xlu0 %1362 }
 0x4c4   : > { %v1399_v43 = vand.u32 4294901760, %v1363_v42 }
 0x4c6   : > { %v1476_v44 = vsub.f32 %v1363_v42, %v1399_v43  ;;  %7923 = vmatpush3.msra.mxu0 %v1399_v43 }
 0x4c7   : > { %v1818_v45 = vpop.permute.xlu0 %1817  ;;  %7932 = vmatprep.subr.mxu0 %v8608_v10 }
 0x4c8   : > { %v1477_v46 = vand.u32 4294901760, %v1476_v44  ;;  %v1821_v47 = vsel %vm900_vm2, %v1818_v45, 0 }
 0x4c9   : > { %v1854_v49 = vand.u32 4294901760, %v1821_v47 }
 0x4ca   : > { %v1478_v48 = vsub.f32 %v1476_v44, %v1477_v46 }
 0x4cb   : > { %v1931_v52 = vsub.f32 %v1821_v47, %v1854_v49  ;;  %v1816_v54 = vpop.permute.xlu0 %1815 }
 0x4cc   : > { %v1479_v50 = vand.u32 4294901760, %v1478_v48  ;;  %v1819_v58 = vsel %vm900_vm2, %v1816_v54, 0 }
 0x4cd   : > { %v8496_v51 = vpop.eup %8495  ;;  %v1932_v57 = vand.u32 4294901760, %v1931_v52  ;;  %v1889_v60 = vand.u32 4294901760, %v1819_v58 }
 0x4ce   : > { %7928 = vmatpush3.msra.mxu1 %v1479_v50  ;;  %v1361_v53 = vmul.f32 %v8496_v51, %v8494_v39 }
 0x4cf   : > { %7937 = vmatprep.subr.mxu1 %v8608_v10  ;;  %v1933_v62 = vsub.f32 %v1931_v52, %v1932_v57  ;;  %v1890_v0 = vsub.f32 %v1819_v58, %v1889_v60 }
 0x4d0   : > { %v1366_v55 = vsel %vm900_vm2, %v1361_v53, 0 }
 0x4d1   : > { %v1434_v56 = vand.u32 4294901760, %v1366_v55  ;;  %v1934_v3 = vand.u32 4294901760, %v1933_v62  ;;  %v1891_v4 = vand.u32 4294901760, %v1890_v0 }
 0x4d3   : > { %v1435_v59 = vsub.f32 %v1366_v55, %v1434_v56  ;;  %7930 = vmatmul.mubr.f32.vlgmr.msra.gmra.mxu1 %v1434_v56  ;;  %v1892_v5 = vsub.f32 %v1890_v0, %v1891_v4 }
 0x4d4   : > { %7938 = vmatpush3.msra.mxu1 %v1399_v43  ;;  %7939 = vmatprep.mubr.msk.f32.mxu1 %vm8609_vm1, %v8608_v10 }
 0x4d5   : > { %7947 = vmatprep.subr.mxu1 %v8608_v10  ;;  %v1436_v61 = vand.u32 4294901760, %v1435_v59  ;;  %v1893_v6 = vand.u32 4294901760, %v1892_v5 }
 0x4d7   : > { %7940 = vmatmul.mubr.f32.vlgmr.msra.gmra.mxu1 %v1436_v61  ;;  %v1437_v63 = vsub.f32 %v1435_v59, %v1436_v61 }
 0x4d8   : > { %7948 = vmatpush3.msra.mxu1 %v1399_v43  ;;  %7949 = vmatprep.mubr.msk.f32.mxu1 %vm8609_vm1, %v8608_v10 }
 0x4d9   : > { %7957 = vmatprep.subr.mxu1 %v8608_v10  ;;  %v1438_v2 = vand.u32 4294901760, %v1437_v63 }
 0x4db   : > { %7925 = vmatmul.mubr.f32.vlgmr.msra.gmra.mxu0 %v1438_v2  ;;  %7950 = vmatmul.mubr.f32.vlgmr.msra.gmra.mxu1 %v1434_v56  ;;  %v2732_v2 = vld [vmem:[%s9608_s5 + $0x8] sm:$0xff] }
 0x4dc   : > { %7933 = vmatpush3.msra.mxu0 %v1476_v44  ;;  %7958 = vmatpush3.xpose.msra.mxu1 %v1934_v3  ;;  %v2767_v3 = vand.u32 4294901760, %v2732_v2 }
 0x4dd   : > { %7934 = vmatprep.mubr.msk.f32.mxu0 %vm8609_vm1, %v8608_v10  ;;  %7942 = vmatprep.subr.mxu0 %v8608_v10 }
 0x4de   : > { %7959 = vmatprep.mubr.msk.f32.mxu1 %vm8609_vm1, %v8608_v10  ;;  %7967 = vmatprep.subr.mxu1 %v8608_v10 }
 0x4df   : > { %7935 = vmatmul.mubr.f32.vlgmr.msra.gmra.mxu0 %v1435_v59  ;;  %7960 = vmatmul.mubr.f32.vlgmr.msra.gmra.mxu1 %v1889_v60 }
 0x4e0   : > { %7943 = vmatpush3.msra.mxu0 %v1477_v46  ;;  %7968 = vmatpush3.xpose.msra.mxu1 %v1854_v49 }
 0x4e1   : > { %7944 = vmatprep.mubr.msk.f32.mxu0 %vm8609_vm1, %v8608_v10  ;;  %7952 = vmatprep.subr.mxu0 %v8608_v10 }
 0x4e2   : > { %7969 = vmatprep.mubr.msk.f32.mxu1 %vm8609_vm1, %v8608_v10  ;;  %7977 = vmatprep.subr.mxu1 %v8608_v10 }
 0x4e3   : > { %7945 = vmatmul.mubr.f32.vlgmr.msra.gmra.mxu0 %v1434_v56  ;;  %7970 = vmatmul.mubr.f32.vlgmr.msra.gmra.mxu1 %v1891_v4  ;;  %v9018_v4 = vsub.f32 %v2732_v2, %v2767_v3 }
 0x4e4   : > { %7953 = vmatpush3.xpose.msra.mxu0 %v1854_v49  ;;  %7978 = vmatpush3.xpose.msra.mxu1 %v1854_v49 }
 0x4e5   : > { %7954 = vmatprep.mubr.msk.f32.mxu0 %vm8609_vm1, %v8608_v10  ;;  %7962 = vmatprep.subr.mxu0 %v8608_v10  ;;  %v2845_v5 = vand.u32 4294901760, %v9018_v4 }
 0x4e6   : > { %7979 = vmatprep.mubr.msk.f32.mxu1 %vm8609_vm1, %v8608_v10  ;;  %7987 = vmatprep.subr.mxu1 %v8608_v10 }
 0x4e7   : > { %7955 = vmatmul.mubr.f32.vlgmr.msra.gmra.mxu0 %v1893_v6  ;;  %7980 = vmatmul.mubr.f32.vlgmr.msra.gmra.mxu1 %v1889_v60  ;;  %v2846_v6 = vsub.f32 %v9018_v4, %v2845_v5 }
 0x4e8   : > { %7963 = vmatpush3.xpose.msra.mxu0 %v1931_v52  ;;  %7964 = vmatprep.mubr.msk.f32.mxu0 %vm8609_vm1, %v8608_v10 }
 0x4e9   : > { %7972 = vmatprep.subr.mxu0 %v8608_v10  ;;  %7989 = vmatprep.mubr.msk.f32.mxu1 %vm8609_vm1, %v8608_v10 }
 0x4eb   : > { %7965 = vmatmul.mubr.f32.vlgmr.msra.gmra.mxu0 %v1890_v0 }
 0x4ec   : > { %7973 = vmatpush3.xpose.msra.mxu0 %v1932_v57  ;;  %7974 = vmatprep.mubr.msk.f32.mxu0 %vm8609_vm1, %v8608_v10 }
 0x4ed   : > { %7982 = vmatprep.subr.mxu0 %v8608_v10 }
 0x4ef   : > { %7975 = vmatmul.mubr.f32.vlgmr.msra.gmra.mxu0 %v1889_v60 }
 0x4f0   : > { %7984 = vmatprep.mubr.msk.f32.mxu0 %vm8609_vm1, %v8608_v10 }
 0x593   : > { %v1516_v7 = vpop.f32.mrf.mxu1 }
 0x595   : > { %v7931_v8 = vpop.f32.mrf.mxu1 }
 0x597   : > { %v1664_v9 = vpop.f32.mrf.mxu1 }
 0x599   : > { %v7941_v11 = vpop.f32.mrf.mxu1 }
 0x59b   : > { %v1440_v12 = vpop.f32.mrf.mxu0  ;;  %v1810_v13 = vpop.f32.mrf.mxu1 }
 0x59c   : > { %v1517_v14 = vadd.f32 %v1516_v7, %v1440_v12  ;;  %v2847_v7 = vand.u32 4294901760, %v2846_v6 }
 0x59d   : > { %v7926_v15 = vpop.f32.mrf.mxu0  ;;  %v7951_v16 = vpop.f32.mrf.mxu1 }
 0x59f   : > { %v1590_v17 = vpop.f32.mrf.mxu0  ;;  %v1971_v19 = vpop.f32.mrf.mxu1 }
 0x5a0   : > { %v1591_v20 = vadd.f32 %v1590_v17, %v1517_v14 }
 0x5a1   : > { %v7936_v21 = vpop.f32.mrf.mxu0  ;;  %v7961_v22 = vpop.f32.mrf.mxu1 }
 0x5a2   : > { %v1665_v23 = vadd.f32 %v1664_v9, %v1591_v20 }
 0x5a3   : > { %v1738_v24 = vpop.f32.mrf.mxu0  ;;  %v2119_v25 = vpop.f32.mrf.mxu1 }
 0x5a4   : > { %v1739_v26 = vadd.f32 %v1738_v24, %v1665_v23 }
 0x5a5   : > { %v7946_v27 = vpop.f32.mrf.mxu0  ;;  %v7971_v28 = vpop.f32.mrf.mxu1 }
 0x5a6   : > { %v8988_v29 = vadd.f32 %v1810_v13, %v1739_v26 }
 0x5a7   : > { %v1895_v30 = vpop.f32.mrf.mxu0  ;;  %v2265_v31 = vpop.f32.mrf.mxu1 }
 0x5a8   : > { %v1896_v32 = vadd.f32 %v1895_v30, %v8941_v18 }
 0x5a9   : > { %v7956_v33 = vpop.f32.mrf.mxu0  ;;  %v7981_v34 = vpop.f32.mrf.mxu1 }
 0x5aa   : > { %v1972_v35 = vadd.f32 %v1971_v19, %v1896_v32  ;;  %v1814_v19 = vld [vmem:[%s9608_s5] sm:$0xff] }
 0x5ab   : > { %v2045_v36 = vpop.f32.mrf.mxu0  ;;  %v3216_v23 = vand.u32 4294901760, %v1814_v19 }
 0x5ac   : > { %v2046_v37 = vadd.f32 %v2045_v36, %v1972_v35  ;;  %v3183_v35 = vsel %vm900_vm2, %v8988_v29, 0 }
 0x5ad   : > { %v7966_v38 = vpop.f32.mrf.mxu0  ;;  %v9027_v28 = vsub.f32 %v1814_v19, %v3216_v23 }
 0x5ae   : > { %v2120_v39 = vadd.f32 %v2119_v25, %v2046_v37  ;;  %v9036_v38 = vand.u32 4294901760, %v3183_v35 }
 0x5af   : > { %v2193_v40 = vpop.f32.mrf.mxu0  ;;  %v3294_v34 = vand.u32 4294901760, %v9027_v28 }
 0x5b0   : > { %v2194_v41 = vadd.f32 %v2193_v40, %v2120_v39 }
 0x5b1   : > { %v7976_v42 = vpop.f32.mrf.mxu0  ;;  %v3295_v40 = vsub.f32 %v9027_v28, %v3294_v34 }
 0x5b2   : > { %v2266_v43 = vadd.f32 %v2265_v31, %v2194_v41  ;;  %v3252_v42 = vsub.f32 %v3183_v35, %v9036_v38 }
 0x5b4   : > { %v2269_v44 = vsel %vm900_vm2, %v2266_v43, -inf }
 0x5b5   : > { %2270 = vmax.xlane.f32.xlu1 %v2269_v44  ;;  %v3296_v44 = vand.u32 4294901760, %v3295_v40 }
 0x5c6   : > { %2280 = vrot.lane.b32.xlu1 %v8909_v1, %s8614_s14 }
 0x5ca   : > { %3633 = vrot.lane.b32.xlu1 %v8909_v1, %s8615_s17 }
 0x5ce   : > { %3631 = vrot.lane.b32.xlu1 %v8909_v1, %s8616_s20  ;;  %s8620_s20 = smov 40  }
 0x63e   : > { %v2271_v45 = vpop.xlane.xlu1 %2270 }
 0x63f   : > { %v2272_v46 = vsub.f32 %v2266_v43, %v2271_v45 }
 0x641   : > { %v2273_v47 = vmul.f32 1.442695, %v2272_v46 }
 0x642   : > { %v2281_v48 = vpop.permute.xlu1 %2280 }
 0x643   : > { %8497 = vpow2.f32 %v2273_v47  ;;  %v2317_v49 = vand.u32 4294901760, %v2281_v48  ;;  %v3253_v47 = vand.u32 4294901760, %v3252_v42 }
 0x645   : > { %v2394_v50 = vsub.f32 %v2281_v48, %v2317_v49  ;;  %7983 = vmatpush3.msra.mxu0 %v2317_v49 }
 0x646   : > { %7992 = vmatprep.subr.mxu0 %v8608_v10  ;;  %v3634_v31 = vpop.permute.xlu1 %3633 }
 0x647   : > { %v2395_v51 = vand.u32 4294901760, %v2394_v50  ;;  %v3637_v36 = vsel %vm900_vm2, %v3634_v31, 0 }
 0x648   : > { %v9042_v41 = vand.u32 4294901760, %v3637_v36 }
 0x649   : > { %v2396_v52 = vsub.f32 %v2394_v50, %v2395_v51 }
 0x64a   : > { %v9049_v45 = vsub.f32 %v3637_v36, %v9042_v41  ;;  %v3632_v46 = vpop.permute.xlu1 %3631 }
 0x64b   : > { %v2397_v53 = vand.u32 4294901760, %v2396_v52 }
 0x64c   : > { %v3748_v48 = vand.u32 4294901760, %v9049_v45 }
 0x64d   : > { %7988 = vmatpush3.msra.mxu1 %v2397_v53 }
 0x64e   : > { %7997 = vmatprep.subr.mxu1 %v8608_v10  ;;  %v3749_v52 = vsub.f32 %v9049_v45, %v3748_v48 }
 0x650   : > { %v8498_v54 = vpop.eup %8497 }
 0x651   : > { %v2275_v55 = vsel %vm900_vm2, %v8498_v54, 0.0 }
 0x652   : > { %2276 = vadd.xlane.f32.xlu0 %v2275_v55  ;;  %v3750_v55 = vand.u32 4294901760, %v3749_v52 }
 0x6db   : > { %v2277_v56 = vpop.xlane.xlu0 %2276 }
 0x6dc   : > { %8499 = vrcp.f32 %v2277_v56 }
 0x6e9   : > { %v8500_v57 = vpop.eup %8499 }
 0x6ea   : > { %v2279_v58 = vmul.f32 %v8500_v57, %v8498_v54 }
 0x6ec   : > { %v2284_v59 = vsel %vm900_vm2, %v2279_v58, 0 }
 0x6ed   : > { %v2352_v60 = vand.u32 4294901760, %v2284_v59 }
 0x6ef   : > { %v2353_v61 = vsub.f32 %v2284_v59, %v2352_v60  ;;  %7990 = vmatmul.mubr.f32.vlgmr.msra.gmra.mxu1 %v2352_v60 }
 0x6f0   : > { %7998 = vmatpush3.msra.mxu1 %v2317_v49  ;;  %7999 = vmatprep.mubr.msk.f32.mxu1 %vm8609_vm1, %v8608_v10 }
 0x6f1   : > { %8007 = vmatprep.subr.mxu1 %v8608_v10  ;;  %v2354_v62 = vand.u32 4294901760, %v2353_v61 }
 0x6f3   : > { %8000 = vmatmul.mubr.f32.vlgmr.msra.gmra.mxu1 %v2354_v62  ;;  %v2355_v63 = vsub.f32 %v2353_v61, %v2354_v62 }
 0x6f4   : > { %8008 = vmatpush3.msra.mxu1 %v2317_v49  ;;  %8009 = vmatprep.mubr.msk.f32.mxu1 %vm8609_vm1, %v8608_v10  ;;  %v3635_v49 = vsel %vm900_vm2, %v3632_v46, 0 }
 0x6f5   : > { %v2356_v0 = vand.u32 4294901760, %v2355_v63  ;;  %8017 = vmatprep.subr.mxu1 %v8608_v10 }
 0x6f7   : > { %7985 = vmatmul.mubr.f32.vlgmr.msra.gmra.mxu0 %v2356_v0  ;;  %8010 = vmatmul.mubr.f32.vlgmr.msra.gmra.mxu1 %v2352_v60 }
 0x6f8   : > { %7993 = vmatpush3.msra.mxu0 %v2394_v50  ;;  %7994 = vmatprep.mubr.msk.f32.mxu0 %vm8609_vm1, %v8608_v10  ;;  %v3705_v50 = vand.u32 4294901760, %v3635_v49 }
 0x6f9   : > { %8002 = vmatprep.subr.mxu0 %v8608_v10  ;;  %8019 = vmatprep.mubr.msk.f32.mxu1 %vm8609_vm1, %v8608_v10 }
 0x6fa   : > { %8018 = vmatpush3.msra.mxu1 %v2847_v7  ;;  %v3706_v53 = vsub.f32 %v3635_v49, %v3705_v50 }
 0x6fb   : > { %7995 = vmatmul.mubr.f32.vlgmr.msra.gmra.mxu0 %v2353_v61  ;;  %8027 = vmatprep.subr.mxu1 %v8608_v10 }
 0x6fc   : > { %8003 = vmatpush3.msra.mxu0 %v2395_v51  ;;  %8004 = vmatprep.mubr.msk.f32.mxu0 %vm8609_vm1, %v8608_v10  ;;  %v3254_v51 = vsub.f32 %v3252_v42, %v3253_v47  ;;  %v3707_v56 = vand.u32 4294901760, %v3706_v53 }
 0x6fd   : > { %8012 = vmatprep.subr.mxu0 %v8608_v10 }
 0x6fe   : > { %v3255_v54 = vand.u32 4294901760, %v3254_v51  ;;  %v3708_v57 = vsub.f32 %v3706_v53, %v3707_v56 }
 0x6ff   : > { %8005 = vmatmul.mubr.f32.vlgmr.msra.gmra.mxu0 %v2352_v60 }
 0x700   : > { %8014 = vmatprep.mubr.msk.f32.mxu0 %vm8609_vm1, %v8608_v10  ;;  %8013 = vmatpush3.msra.mxu0 %v2767_v3  ;;  %v3709_v58 = vand.u32 4294901760, %v3708_v57 }
 0x701   : > { %8022 = vmatprep.subr.mxu0 %v8608_v10 }
 0x7af   : > { %v2434_v8 = vpop.f32.mrf.mxu1 }
 0x7b1   : > { %v7991_v9 = vpop.f32.mrf.mxu1 }
 0x7b3   : > { %v2582_v11 = vpop.f32.mrf.mxu1 }
 0x7b5   : > { %v8001_v12 = vpop.f32.mrf.mxu1 }
 0x7b7   : > { %v2358_v13 = vpop.f32.mrf.mxu0  ;;  %v2728_v14 = vpop.f32.mrf.mxu1 }
 0x7b8   : > { %v2435_v17 = vadd.f32 %v2434_v8, %v2358_v13 }
 0x7b9   : > { %v7986_v15 = vpop.f32.mrf.mxu0  ;;  %v8011_v16 = vpop.f32.mrf.mxu1 }
 0x7bb   : > { %v2508_v20 = vpop.f32.mrf.mxu0 }
 0x7bc   : > { %v2509_v21 = vadd.f32 %v2508_v20, %v2435_v17 }
 0x7bd   : > { %v7996_v22 = vpop.f32.mrf.mxu0 }
 0x7be   : > { %v2583_v24 = vadd.f32 %v2582_v11, %v2509_v21 }
 0x7bf   : > { %v2656_v25 = vpop.f32.mrf.mxu0 }
 0x7c0   : > { %v2657_v26 = vadd.f32 %v2656_v25, %v2583_v24 }
 0x7c1   : > { %v8006_v27 = vpop.f32.mrf.mxu0 }
 0x7c2   : > { %v2729_v30 = vadd.f32 %v2728_v14, %v2657_v26 }
 0x7c4   : > { %v2734_v32 = vsel %vm900_vm2, %v2729_v30, 0 }
 0x7c5   : > { %v2802_v33 = vand.u32 4294901760, %v2734_v32 }
 0x7c7   : > { %v2803_v37 = vsub.f32 %v2734_v32, %v2802_v33  ;;  %8020 = vmatmul.mubr.f32.vlgmr.msra.gmra.mxu1 %v2802_v33 }
 0x7c8   : > { %8028 = vmatpush3.msra.mxu1 %v2767_v3  ;;  %8029 = vmatprep.mubr.msk.f32.mxu1 %vm8609_vm1, %v8608_v10 }
 0x7c9   : > { %v2804_v39 = vand.u32 4294901760, %v2803_v37  ;;  %8037 = vmatprep.subr.mxu1 %v8608_v10 }
 0x7cb   : > { %8030 = vmatmul.mubr.f32.vlgmr.msra.gmra.mxu1 %v2804_v39  ;;  %v2805_v29 = vsub.f32 %v2803_v37, %v2804_v39 }
 0x7cc   : > { %8038 = vmatpush3.msra.mxu1 %v2767_v3  ;;  %8039 = vmatprep.mubr.msk.f32.mxu1 %vm8609_vm1, %v8608_v10 }
 0x7cd   : > { %v2806_v43 = vand.u32 4294901760, %v2805_v29  ;;  %8047 = vmatprep.subr.mxu1 %v8608_v10 }
 0x7cf   : > { %8015 = vmatmul.mubr.f32.vlgmr.msra.gmra.mxu0 %v2806_v43  ;;  %8040 = vmatmul.mubr.f32.vlgmr.msra.gmra.mxu1 %v2802_v33 }
 0x7d0   : > { %8023 = vmatpush3.msra.mxu0 %v9018_v4  ;;  %8024 = vmatprep.mubr.msk.f32.mxu0 %vm8609_vm1, %v8608_v10 }
 0x7d1   : > { %8048 = vmatpush3.msra.mxu1 %v3296_v44  ;;  %8049 = vmatprep.mubr.msk.f32.mxu1 %vm8609_vm1, %v8608_v10 }
 0x7d2   : > { %8032 = vmatprep.subr.mxu0 %v8608_v10  ;;  %8057 = vmatprep.subr.mxu1 %v8608_v10 }
 0x7d3   : > { %8025 = vmatmul.mubr.f32.vlgmr.msra.gmra.mxu0 %v2803_v37  ;;  %8050 = vmatmul.mubr.f32.vlgmr.msra.gmra.mxu1 %v9036_v38 }
 0x7d4   : > { %8033 = vmatpush3.msra.mxu0 %v2845_v5  ;;  %8034 = vmatprep.mubr.msk.f32.mxu0 %vm8609_vm1, %v8608_v10 }
 0x7d5   : > { %8058 = vmatpush3.msra.mxu1 %v3216_v23  ;;  %8059 = vmatprep.mubr.msk.f32.mxu1 %vm8609_vm1, %v8608_v10 }
 0x7d6   : > { %8042 = vmatprep.subr.mxu0 %v8608_v10  ;;  %8067 = vmatprep.subr.mxu1 %v8608_v10 }
 0x7d7   : > { %8035 = vmatmul.mubr.f32.vlgmr.msra.gmra.mxu0 %v2802_v33  ;;  %8060 = vmatmul.mubr.f32.vlgmr.msra.gmra.mxu1 %v3253_v47 }
 0x7d8   : > { %8043 = vmatpush3.msra.mxu0 %v3216_v23  ;;  %8068 = vmatpush3.msra.mxu1 %v3216_v23 }
 0x7d9   : > { %8044 = vmatprep.mubr.msk.f32.mxu0 %vm8609_vm1, %v8608_v10  ;;  %8069 = vmatprep.mubr.msk.f32.mxu1 %vm8609_vm1, %v8608_v10 }
 0x7da   : > { %8077 = vmatprep.subr.mxu1 %v8608_v10  ;;  %8052 = vmatprep.subr.mxu0 %v8608_v10 }
 0x7db   : > { %8045 = vmatmul.mubr.f32.vlgmr.msra.gmra.mxu0 %v3255_v54  ;;  %8070 = vmatmul.mubr.f32.vlgmr.msra.gmra.mxu1 %v9036_v38 }
 0x7dc   : > { %8078 = vmatpush3.xpose.msra.mxu1 %v3750_v55  ;;  %8053 = vmatpush3.msra.mxu0 %v9027_v28 }
 0x7dd   : > { %8054 = vmatprep.mubr.msk.f32.mxu0 %vm8609_vm1, %v8608_v10  ;;  %8079 = vmatprep.mubr.msk.f32.mxu1 %vm8609_vm1, %v8608_v10 }
 0x7de   : > { %8087 = vmatprep.subr.mxu1 %v8608_v10  ;;  %8062 = vmatprep.subr.mxu0 %v8608_v10 }
 0x7df   : > { %8055 = vmatmul.mubr.f32.vlgmr.msra.gmra.mxu0 %v3252_v42  ;;  %8080 = vmatmul.mubr.f32.vlgmr.msra.gmra.mxu1 %v3705_v50 }
 0x7e0   : > { %8088 = vmatpush3.xpose.msra.mxu1 %v9042_v41  ;;  %8063 = vmatpush3.msra.mxu0 %v3294_v34 }
 0x7e1   : > { %8064 = vmatprep.mubr.msk.f32.mxu0 %vm8609_vm1, %v8608_v10  ;;  %8072 = vmatprep.subr.mxu0 %v8608_v10 }
 0x7e2   : > { %8089 = vmatprep.mubr.msk.f32.mxu1 %vm8609_vm1, %v8608_v10  ;;  %8097 = vmatprep.subr.mxu1 %v8608_v10 }
 0x7e3   : > { %8065 = vmatmul.mubr.f32.vlgmr.msra.gmra.mxu0 %v9036_v38  ;;  %8090 = vmatmul.mubr.f32.vlgmr.msra.gmra.mxu1 %v3707_v56 }
 0x7e4   : > { %8073 = vmatpush3.xpose.msra.mxu0 %v9042_v41  ;;  %8098 = vmatpush3.xpose.msra.mxu1 %v9042_v41 }
 0x7e5   : > { %8074 = vmatprep.mubr.msk.f32.mxu0 %vm8609_vm1, %v8608_v10  ;;  %8082 = vmatprep.subr.mxu0 %v8608_v10 }
 0x7e6   : > { %8099 = vmatprep.mubr.msk.f32.mxu1 %vm8609_vm1, %v8608_v10  ;;  %8107 = vmatprep.subr.mxu1 %v8608_v10 }
 0x7e7   : > { %8075 = vmatmul.mubr.f32.vlgmr.msra.gmra.mxu0 %v3709_v58  ;;  %8100 = vmatmul.mubr.f32.vlgmr.msra.gmra.mxu1 %v3705_v50 }
 0x7e8   : > { %8083 = vmatpush3.xpose.msra.mxu0 %v9049_v45  ;;  %8084 = vmatprep.mubr.msk.f32.mxu0 %vm8609_vm1, %v8608_v10 }
 0x7e9   : > { %8092 = vmatprep.subr.mxu0 %v8608_v10  ;;  %8109 = vmatprep.mubr.msk.f32.mxu1 %vm8609_vm1, %v8608_v10 }
 0x7eb   : > { %8085 = vmatmul.mubr.f32.vlgmr.msra.gmra.mxu0 %v3706_v53 }
 0x7ec   : > { %8093 = vmatpush3.xpose.msra.mxu0 %v3748_v48  ;;  %8094 = vmatprep.mubr.msk.f32.mxu0 %vm8609_vm1, %v8608_v10 }
 0x7ed   : > { %8102 = vmatprep.subr.mxu0 %v8608_v10 }
 0x7ef   : > { %8095 = vmatmul.mubr.f32.vlgmr.msra.gmra.mxu0 %v3705_v50 }
 0x7f0   : > { %8104 = vmatprep.mubr.msk.f32.mxu0 %vm8609_vm1, %v8608_v10 }
 0x887   : > { %v2884_v59 = vpop.f32.mrf.mxu1 }
 0x889   : > { %v8021_v60 = vpop.f32.mrf.mxu1 }
 0x88b   : > { %v3032_v61 = vpop.f32.mrf.mxu1 }
 0x88d   : > { %v8031_v62 = vpop.f32.mrf.mxu1 }
 0x88f   : > { %v2808_v63 = vpop.f32.mrf.mxu0  ;;  %v3178_v0 = vpop.f32.mrf.mxu1 }
 0x890   : > { %v2885_v2 = vadd.f32 %v2884_v59, %v2808_v63 }
 0x891   : > { %v8016_v3 = vpop.f32.mrf.mxu0  ;;  %v8041_v4 = vpop.f32.mrf.mxu1 }
 0x893   : > { %v2958_v5 = vpop.f32.mrf.mxu0  ;;  %v3333_v6 = vpop.f32.mrf.mxu1 }
 0x894   : > { %v2959_v7 = vadd.f32 %v2958_v5, %v2885_v2 }
 0x895   : > { %v8026_v8 = vpop.f32.mrf.mxu0  ;;  %v8051_v9 = vpop.f32.mrf.mxu1 }
 0x896   : > { %v3033_v11 = vadd.f32 %v3032_v61, %v2959_v7  ;;  %v4548_v8 = vld [vmem:[%s9608_s5 + $0x10] sm:$0xff] }
 0x897   : > { %v3106_v12 = vpop.f32.mrf.mxu0  ;;  %v3481_v13 = vpop.f32.mrf.mxu1  ;;  %v4583_v9 = vand.u32 4294901760, %v4548_v8 }
 0x898   : > { %v3107_v14 = vadd.f32 %v3106_v12, %v3033_v11 }
 0x899   : > { %v8036_v15 = vpop.f32.mrf.mxu0  ;;  %v8061_v16 = vpop.f32.mrf.mxu1  ;;  %v4660_v11 = vsub.f32 %v4548_v8, %v4583_v9 }
 0x89a   : > { %v3179_v17 = vadd.f32 %v3178_v0, %v3107_v14 }
 0x89b   : > { %v3257_v19 = vpop.f32.mrf.mxu0  ;;  %v3627_v20 = vpop.f32.mrf.mxu1  ;;  %v4661_v12 = vand.u32 4294901760, %v4660_v11 }
 0x89c   : > { %v3258_v21 = vadd.f32 %v3257_v19, %v3179_v17 }
 0x89d   : > { %v8046_v22 = vpop.f32.mrf.mxu0  ;;  %v8071_v23 = vpop.f32.mrf.mxu1 }
 0x89e   : > { %v3334_v24 = vadd.f32 %v3333_v6, %v3258_v21 }
 0x89f   : > { %v3407_v25 = vpop.f32.mrf.mxu0  ;;  %v3787_v26 = vpop.f32.mrf.mxu1 }
 0x8a0   : > { %v3408_v27 = vadd.f32 %v3407_v25, %v3334_v24 }
 0x8a1   : > { %v8056_v28 = vpop.f32.mrf.mxu0  ;;  %v8081_v30 = vpop.f32.mrf.mxu1 }
 0x8a2   : > { %v3482_v31 = vadd.f32 %v3481_v13, %v3408_v27  ;;  %v4662_v13 = vsub.f32 %v4660_v11, %v4661_v12 }
 0x8a3   : > { %v3555_v32 = vpop.f32.mrf.mxu0  ;;  %v3935_v33 = vpop.f32.mrf.mxu1 }
 0x8a4   : > { %v3556_v34 = vadd.f32 %v3555_v32, %v3482_v31  ;;  %v4663_v14 = vand.u32 4294901760, %v4662_v13 }
 0x8a5   : > { %v8066_v35 = vpop.f32.mrf.mxu0  ;;  %v8091_v36 = vpop.f32.mrf.mxu1 }
 0x8a6   : > { %v9111_v37 = vadd.f32 %v3627_v20, %v3556_v34 }
 0x8a7   : > { %v3711_v38 = vpop.f32.mrf.mxu0  ;;  %v4081_v39 = vpop.f32.mrf.mxu1 }
 0x8a8   : > { %v3712_v40 = vadd.f32 %v3711_v38, %v8941_v18 }
 0x8a9   : > { %v8076_v41 = vpop.f32.mrf.mxu0  ;;  %v8101_v29 = vpop.f32.mrf.mxu1 }
 0x8aa   : > { %v3788_v42 = vadd.f32 %v3787_v26, %v3712_v40 }
 0x8ab   : > { %v3861_v43 = vpop.f32.mrf.mxu0 }
 0x8ac   : > { %v3862_v44 = vadd.f32 %v3861_v43, %v3788_v42 }
 0x8ad   : > { %v8086_v45 = vpop.f32.mrf.mxu0 }
 0x8ae   : > { %v3936_v46 = vadd.f32 %v3935_v33, %v3862_v44 }
 0x8af   : > { %v4009_v47 = vpop.f32.mrf.mxu0 }
 0x8b0   : > { %v4010_v48 = vadd.f32 %v4009_v47, %v3936_v46 }
 0x8b1   : > { %v8096_v49 = vpop.f32.mrf.mxu0 }
 0x8b2   : > { %v4082_v50 = vadd.f32 %v4081_v39, %v4010_v48 }
 0x8b4   : > { %v4085_v51 = vsel %vm900_vm2, %v4082_v50, -inf }
 0x8b5   : > { %4086 = vmax.xlane.f32.xlu1 %v4085_v51 }
 0x93e   : > { %v4087_v52 = vpop.xlane.xlu1 %4086 }
 0x93f   : > { %v4088_v53 = vsub.f32 %v4082_v50, %v4087_v52 }
 0x941   : > { %v4089_v54 = vmul.f32 1.442695, %v4088_v53 }
 0x943   : > { %8501 = vpow2.f32 %v4089_v54 }
 0x950   : > { %v8502_v55 = vpop.eup %8501 }
 0x951   : > { %v4091_v18 = vsel %vm900_vm2, %v8502_v55, 0.0 }
 0x952   : > { %4092 = vadd.xlane.f32.xlu0 %v4091_v18 }
 0x968   : > { %4096 = vrot.lane.b32.xlu0 %v8909_v1, %s8617_s24 }
 0x96c   : > { %5001 = vrot.lane.b32.xlu0 %v8909_v1, %s8618_s25  ;;  %s8541_s25 = scalar_lea.vmem %s7466_s26, 128 }
 0x96d   : > { %p8542_p12 = scmp.ne.s32.totalorder %s7466_s26, %s8541_s25 }
 0x96f   : > { %p8543_p1 = pnand %p8542_p12, %p9626_p13 }
 0x970   : > { %4999 = vrot.lane.b32.xlu0 %v8909_v1, %s8619_s28 }
 0x971   : > { %p8544_p3 = pneg %p8543_p1 }
 0x9db   : > { %v4093_v56 = vpop.xlane.xlu0 %4092 }
 0x9dc   : > { %8503 = vrcp.f32 %v4093_v56 }
 0x9df   : > { %v4097_v57 = vpop.permute.xlu0 %4096 }
 0x9e0   : > { %v4133_v58 = vand.u32 4294901760, %v4097_v57 }
 0x9e2   : > { %v4210_v59 = vsub.f32 %v4097_v57, %v4133_v58  ;;  %8103 = vmatpush3.msra.mxu0 %v4133_v58 }
 0x9e3   : > { %8112 = vmatprep.subr.mxu0 %v8608_v10  ;;  %v5002_v22 = vpop.permute.xlu0 %5001 }
 0x9e4   : > { %v4211_v60 = vand.u32 4294901760, %v4210_v59  ;;  %v5005_v26 = vsel %vm900_vm2, %v5002_v22, 0 }
 0x9e5   : > { %v5038_v31 = vand.u32 4294901760, %v5005_v26 }
 0x9e6   : > { %v4212_v61 = vsub.f32 %v4210_v59, %v4211_v60 }
 0x9e7   : > { %v5115_v36 = vsub.f32 %v5005_v26, %v5038_v31  ;;  %v5000_v39 = vpop.permute.xlu0 %4999 }
 0x9e8   : > { %v4213_v62 = vand.u32 4294901760, %v4212_v61  ;;  %v5003_v42 = vsel %vm900_vm2, %v5000_v39, 0 }
 0x9e9   : > { %v8504_v63 = vpop.eup %8503  ;;  %v5116_v29 = vand.u32 4294901760, %v5115_v36  ;;  %v5073_v44 = vand.u32 4294901760, %v5003_v42 }
 0x9ea   : > { %8108 = vmatpush3.msra.mxu1 %v4213_v62  ;;  %v4095_v0 = vmul.f32 %v8504_v63, %v8502_v55 }
 0x9eb   : > { %8117 = vmatprep.subr.mxu1 %v8608_v10  ;;  %v5117_v46 = vsub.f32 %v5115_v36, %v5116_v29  ;;  %v5074_v48 = vsub.f32 %v5003_v42, %v5073_v44 }
 0x9ec   : > { %v4100_v2 = vsel %vm900_vm2, %v4095_v0, 0 }
 0x9ed   : > { %v4168_v3 = vand.u32 4294901760, %v4100_v2  ;;  %v5118_v50 = vand.u32 4294901760, %v5117_v46  ;;  %v5075_v51 = vand.u32 4294901760, %v5074_v48 }
 0x9ef   : > { %v4169_v4 = vsub.f32 %v4100_v2, %v4168_v3  ;;  %8110 = vmatmul.mubr.f32.vlgmr.msra.gmra.mxu1 %v4168_v3  ;;  %v5076_v52 = vsub.f32 %v5074_v48, %v5075_v51 }
 0x9f0   : > { %8118 = vmatpush3.msra.mxu1 %v4133_v58  ;;  %8119 = vmatprep.mubr.msk.f32.mxu1 %vm8609_vm1, %v8608_v10 }
 0x9f1   : > { %8127 = vmatprep.subr.mxu1 %v8608_v10  ;;  %v4170_v5 = vand.u32 4294901760, %v4169_v4  ;;  %v5077_v53 = vand.u32 4294901760, %v5076_v52 }
 0x9f3   : > { %8120 = vmatmul.mubr.f32.vlgmr.msra.gmra.mxu1 %v4170_v5  ;;  %v4171_v6 = vsub.f32 %v4169_v4, %v4170_v5 }
 0x9f4   : > { %8128 = vmatpush3.msra.mxu1 %v4133_v58  ;;  %8129 = vmatprep.mubr.msk.f32.mxu1 %vm8609_vm1, %v8608_v10 }
 0x9f5   : > { %v4172_v7 = vand.u32 4294901760, %v4171_v6  ;;  %8137 = vmatprep.subr.mxu1 %v8608_v10 }
 0x9f7   : > { %8105 = vmatmul.mubr.f32.vlgmr.msra.gmra.mxu0 %v4172_v7  ;;  %8130 = vmatmul.mubr.f32.vlgmr.msra.gmra.mxu1 %v4168_v3 }
 0x9f8   : > { %8113 = vmatpush3.msra.mxu0 %v4210_v59  ;;  %8114 = vmatprep.mubr.msk.f32.mxu0 %vm8609_vm1, %v8608_v10 }
 0x9f9   : > { %8122 = vmatprep.subr.mxu0 %v8608_v10  ;;  %8139 = vmatprep.mubr.msk.f32.mxu1 %vm8609_vm1, %v8608_v10 }
 0x9fa   : > { %8138 = vmatpush3.msra.mxu1 %v4663_v14 }
 0x9fb   : > { %8115 = vmatmul.mubr.f32.vlgmr.msra.gmra.mxu0 %v4169_v4  ;;  %8147 = vmatprep.subr.mxu1 %v8608_v10 }
 0x9fc   : > { %8123 = vmatpush3.msra.mxu0 %v4211_v60  ;;  %8124 = vmatprep.mubr.msk.f32.mxu0 %vm8609_vm1, %v8608_v10 }
 0x9fd   : > { %8132 = vmatprep.subr.mxu0 %v8608_v10 }
 0x9ff   : > { %8125 = vmatmul.mubr.f32.vlgmr.msra.gmra.mxu0 %v4168_v3 }
 0xa00   : > { %8134 = vmatprep.mubr.msk.f32.mxu0 %vm8609_vm1, %v8608_v10  ;;  %8133 = vmatpush3.msra.mxu0 %v4583_v9 }
 0xa01   : > { %8142 = vmatprep.subr.mxu0 %v8608_v10 }
 0xaaf   : > { %v4250_v15 = vpop.f32.mrf.mxu1 }
 0xab1   : > { %v8111_v16 = vpop.f32.mrf.mxu1 }
 0xab3   : > { %v4398_v17 = vpop.f32.mrf.mxu1 }
 0xab5   : > { %v8121_v19 = vpop.f32.mrf.mxu1 }
 0xab7   : > { %v4174_v20 = vpop.f32.mrf.mxu0  ;;  %v4544_v21 = vpop.f32.mrf.mxu1 }
 0xab8   : > { %v4251_v25 = vadd.f32 %v4250_v15, %v4174_v20  ;;  %v8511_v15 = vld [vmem:[%s8938_s29] sm:$0xff]  ;;  %s7565_s29 = sshll.u32 %s8693_s13, 7  ;;  %s8621_s13 = smov [#allocation5]  }
 0xab9   : > { %v8106_v23 = vpop.f32.mrf.mxu0  ;;  %v8131_v24 = vpop.f32.mrf.mxu1  ;;  %s7463_s24 = scalar_lea.hbm %s9612_s9, %s7565_s29  ;;  %s8545_s28 = sshll.u32 %s8621_s13, 4  ;;  %s8546_s28 = int_to_ptr.vmem [resolvable:$false] %s8545_s28 }
 0xaba   : > { %s8547_s11 = scalar_lea.vmem %s8546_s28, 256  ;;  %p8548_p5 = scmp.lt.s32.totalorder %s7466_s26, %s8546_s28 }
 0xabb   : > { %v4324_v27 = vpop.f32.mrf.mxu0  ;;  %p8549_p8 = scmp.lt.s32.totalorder %s8547_s11, %s8541_s25 }
 0xabc   : > { %v4325_v28 = vadd.f32 %v4324_v27, %v4251_v25 }
 0xabd   : > { %v8116_v30 = vpop.f32.mrf.mxu0  ;;  %p8550_p10 = por %p8549_p8, %p8548_p5 }
 0xabe   : > { %v4399_v32 = vadd.f32 %v4398_v17, %v4325_v28 }
 0xabf   : > { %v4472_v33 = vpop.f32.mrf.mxu0  ;;  %p8551_p2 = pnand %p8550_p10, %p8544_p3 }
 0xac0   : > { %v4473_v34 = vadd.f32 %v4472_v33, %v4399_v32 }
 0xac1   : > { %v8126_v35 = vpop.f32.mrf.mxu0 }
 0xac2   : > { %v4545_v38 = vadd.f32 %v4544_v21, %v4473_v34 }
 0xac4   : > { %v4550_v40 = vsel %vm900_vm2, %v4545_v38, 0 }
 0xac5   : > { %v4618_v41 = vand.u32 4294901760, %v4550_v40 }
 0xac7   : > { %v4619_v43 = vsub.f32 %v4550_v40, %v4618_v41  ;;  %8140 = vmatmul.mubr.f32.vlgmr.msra.gmra.mxu1 %v4618_v41 }
 0xac8   : > { %8148 = vmatpush3.msra.mxu1 %v4583_v9  ;;  %8149 = vmatprep.mubr.msk.f32.mxu1 %vm8609_vm1, %v8608_v10 }
 0xac9   : > { %v4620_v45 = vand.u32 4294901760, %v4619_v43  ;;  %8157 = vmatprep.subr.mxu1 %v8608_v10 }
 0xacb   : > { %8150 = vmatmul.mubr.f32.vlgmr.msra.gmra.mxu1 %v4620_v45  ;;  %v4621_v47 = vsub.f32 %v4619_v43, %v4620_v45 }
 0xacc   : > { %8158 = vmatpush3.msra.mxu1 %v4583_v9  ;;  %8159 = vmatprep.mubr.msk.f32.mxu1 %vm8609_vm1, %v8608_v10 }
 0xacd   : > { %8167 = vmatprep.subr.mxu1 %v8608_v10  ;;  %v4622_v49 = vand.u32 4294901760, %v4621_v47 }
 0xacf   : > { %8135 = vmatmul.mubr.f32.vlgmr.msra.gmra.mxu0 %v4622_v49  ;;  %8160 = vmatmul.mubr.f32.vlgmr.msra.gmra.mxu1 %v4618_v41  ;;  %v5916_v49 = vld [vmem:[%s9608_s5 + $0x18] sm:$0xff] }
 0xad0   : > { %8168 = vmatpush3.xpose.msra.mxu1 %v5118_v50  ;;  %8143 = vmatpush3.msra.mxu0 %v4660_v11  ;;  %v5951_v50 = vand.u32 4294901760, %v5916_v49 }
 0xad1   : > { %8144 = vmatprep.mubr.msk.f32.mxu0 %vm8609_vm1, %v8608_v10  ;;  %8169 = vmatprep.mubr.msk.f32.mxu1 %vm8609_vm1, %v8608_v10 }
 0xad2   : > { %8177 = vmatprep.subr.mxu1 %v8608_v10  ;;  %8152 = vmatprep.subr.mxu0 %v8608_v10 }
 0xad3   : > { %8145 = vmatmul.mubr.f32.vlgmr.msra.gmra.mxu0 %v4619_v43  ;;  %8170 = vmatmul.mubr.f32.vlgmr.msra.gmra.mxu1 %v5073_v44 }
 0xad4   : > { %8178 = vmatpush3.xpose.msra.mxu1 %v5038_v31  ;;  %8153 = vmatpush3.msra.mxu0 %v4661_v12 }
 0xad5   : > { %8154 = vmatprep.mubr.msk.f32.mxu0 %vm8609_vm1, %v8608_v10  ;;  %8162 = vmatprep.subr.mxu0 %v8608_v10 }
 0xad6   : > { %8179 = vmatprep.mubr.msk.f32.mxu1 %vm8609_vm1, %v8608_v10  ;;  %8187 = vmatprep.subr.mxu1 %v8608_v10 }
 0xad7   : > { %8155 = vmatmul.mubr.f32.vlgmr.msra.gmra.mxu0 %v4618_v41  ;;  %8180 = vmatmul.mubr.f32.vlgmr.msra.gmra.mxu1 %v5075_v51  ;;  %v6028_v51 = vsub.f32 %v5916_v49, %v5951_v50  ;;  %v6396_v49 = vld [vmem:[%s9609_s6] sm:$0xff] }
 0xad8   : > { %8163 = vmatpush3.xpose.msra.mxu0 %v5038_v31  ;;  %8188 = vmatpush3.xpose.msra.mxu1 %v5038_v31 }
 0xad9   : > { %8164 = vmatprep.mubr.msk.f32.mxu0 %vm8609_vm1, %v8608_v10  ;;  %8172 = vmatprep.subr.mxu0 %v8608_v10  ;;  %v6029_v52 = vand.u32 4294901760, %v6028_v51 }
 0xada   : > { %8189 = vmatprep.mubr.msk.f32.mxu1 %vm8609_vm1, %v8608_v10  ;;  %8197 = vmatprep.subr.mxu1 %v8608_v10 }
 0xadb   : > { %8165 = vmatmul.mubr.f32.vlgmr.msra.gmra.mxu0 %v5077_v53  ;;  %8190 = vmatmul.mubr.f32.vlgmr.msra.gmra.mxu1 %v5073_v44  ;;  %v6030_v53 = vsub.f32 %v6028_v51, %v6029_v52 }
 0xadc   : > { %8173 = vmatpush3.xpose.msra.mxu0 %v5115_v36  ;;  %8174 = vmatprep.mubr.msk.f32.mxu0 %vm8609_vm1, %v8608_v10 }
 0xadd   : > { %8182 = vmatprep.subr.mxu0 %v8608_v10  ;;  %8199 = vmatprep.mubr.msk.f32.mxu1 %vm8609_vm1, %v8608_v10 }
 0xadf   : > { %8175 = vmatmul.mubr.f32.vlgmr.msra.gmra.mxu0 %v5074_v48 }
 0xae0   : > { %8183 = vmatpush3.xpose.msra.mxu0 %v5116_v29  ;;  %8184 = vmatprep.mubr.msk.f32.mxu0 %vm8609_vm1, %v8608_v10 }
 0xae1   : > { %8192 = vmatprep.subr.mxu0 %v8608_v10 }
 0xae3   : > { %8185 = vmatmul.mubr.f32.vlgmr.msra.gmra.mxu0 %v5073_v44 }
 0xae4   : > { %8194 = vmatprep.mubr.msk.f32.mxu0 %vm8609_vm1, %v8608_v10 }
 0xb87   : > { %v4700_v54 = vpop.f32.mrf.mxu1 }
 0xb89   : > { %v8141_v55 = vpop.f32.mrf.mxu1 }
 0xb8b   : > { %v4848_v18 = vpop.f32.mrf.mxu1 }
 0xb8d   : > { %v8151_v56 = vpop.f32.mrf.mxu1 }
 0xb8f   : > { %v4624_v57 = vpop.f32.mrf.mxu0  ;;  %v4994_v58 = vpop.f32.mrf.mxu1 }
 0xb90   : > { %v4701_v59 = vadd.f32 %v4700_v54, %v4624_v57  ;;  %v6031_v54 = vand.u32 4294901760, %v6030_v53 }
 0xb91   : > { %v8136_v60 = vpop.f32.mrf.mxu0  ;;  %v8161_v61 = vpop.f32.mrf.mxu1 }
 0xb93   : > { %v4774_v62 = vpop.f32.mrf.mxu0  ;;  %v5155_v63 = vpop.f32.mrf.mxu1 }
 0xb94   : > { %v4775_v0 = vadd.f32 %v4774_v62, %v4701_v59 }
 0xb95   : > { %v8146_v2 = vpop.f32.mrf.mxu0  ;;  %v8171_v3 = vpop.f32.mrf.mxu1 }
 0xb96   : > { %v4849_v4 = vadd.f32 %v4848_v18, %v4775_v0 }
 0xb97   : > { %v4922_v5 = vpop.f32.mrf.mxu0  ;;  %v5303_v6 = vpop.f32.mrf.mxu1 }
 0xb98   : > { %v4923_v7 = vadd.f32 %v4922_v5, %v4849_v4 }
 0xb99   : > { %v8156_v8 = vpop.f32.mrf.mxu0  ;;  %v8181_v9 = vpop.f32.mrf.mxu1 }
 0xb9a   : > { %v4995_v11 = vadd.f32 %v4994_v58, %v4923_v7 }
 0xb9b   : > { %v5079_v12 = vpop.f32.mrf.mxu0  ;;  %v5449_v13 = vpop.f32.mrf.mxu1 }
 0xb9c   : > { %v9181_v14 = vadd.f32 %v4995_v11, %v9111_v37  ;;  %v5080_v16 = vadd.f32 %v8511_v15, %v5079_v12 }
 0xb9d   : > { %v8166_v17 = vpop.f32.mrf.mxu0  ;;  %v8191_v19 = vpop.f32.mrf.mxu1 }
 0xb9e   : > { %v5156_v20 = vadd.f32 %v5155_v63, %v5080_v16 }
 0xb9f   : > { %v5229_v21 = vpop.f32.mrf.mxu0 }
 0xba0   : > { %v5230_v22 = vadd.f32 %v5229_v21, %v5156_v20 }
 0xba1   : > { %v8176_v23 = vpop.f32.mrf.mxu0 }
 0xba2   : > { %v5304_v24 = vadd.f32 %v5303_v6, %v5230_v22 }
 0xba3   : > { %v5377_v25 = vpop.f32.mrf.mxu0 }
 0xba4   : > { %v5378_v26 = vadd.f32 %v5377_v25, %v5304_v24 }
 0xba5   : > { %v8186_v27 = vpop.f32.mrf.mxu0 }
 0xba6   : > { %v5450_v28 = vadd.f32 %v5449_v13, %v5378_v26 }
 0xba8   : > { %v5453_v30 = vsel %vm900_vm2, %v5450_v28, -inf }
 0xba9   : > { %5454 = vmax.xlane.f32.xlu1 %v5453_v30 }
 0xbba   : > { %5464 = vrot.lane.b32.xlu1 %v8909_v1, %s8620_s20 }
 0xc32   : > { %v5455_v37 = vpop.xlane.xlu1 %5454 }
 0xc33   : > { %v5456_v31 = vsub.f32 %v5450_v28, %v5455_v37 }
 0xc35   : > { %v5457_v32 = vmul.f32 1.442695, %v5456_v31 }
 0xc36   : > { %v5465_v33 = vpop.permute.xlu1 %5464 }
 0xc37   : > { %8505 = vpow2.f32 %v5457_v32  ;;  %v5501_v34 = vand.u32 4294901760, %v5465_v33 }
 0xc39   : > { %v5578_v35 = vsub.f32 %v5465_v33, %v5501_v34  ;;  %8193 = vmatpush3.msra.mxu0 %v5501_v34 }
 0xc3a   : > { %8202 = vmatprep.subr.mxu0 %v8608_v10 }
 0xc3b   : > { %v5579_v36 = vand.u32 4294901760, %v5578_v35 }
 0xc3d   : > { %v5580_v38 = vsub.f32 %v5578_v35, %v5579_v36 }
 0xc3f   : > { %v5581_v39 = vand.u32 4294901760, %v5580_v38 }
 0xc41   : > { %8198 = vmatpush3.msra.mxu1 %v5581_v39 }
 0xc42   : > { %8207 = vmatprep.subr.mxu1 %v8608_v10 }
 0xc44   : > { %v8506_v40 = vpop.eup %8505 }
 0xc45   : > { %v5459_v41 = vsel %vm900_vm2, %v8506_v40, 0.0 }
 0xc46   : > { %5460 = vadd.xlane.f32.xlu0 %v5459_v41 }
 0xccf   : > { %v5461_v1 = vpop.xlane.xlu0 %5460 }
 0xcd0   : > { %8507 = vrcp.f32 %v5461_v1 }
 0xcdd   : > { %v8508_v29 = vpop.eup %8507 }
 0xcde   : > { %v5463_v42 = vmul.f32 %v8508_v29, %v8506_v40 }
 0xce0   : > { %v5468_v43 = vsel %vm900_vm2, %v5463_v42, 0 }
 0xce1   : > { %v5536_v44 = vand.u32 4294901760, %v5468_v43 }
 0xce3   : > { %v5537_v45 = vsub.f32 %v5468_v43, %v5536_v44  ;;  %8200 = vmatmul.mubr.f32.vlgmr.msra.gmra.mxu1 %v5536_v44 }
 0xce4   : > { %8208 = vmatpush3.msra.mxu1 %v5501_v34  ;;  %8209 = vmatprep.mubr.msk.f32.mxu1 %vm8609_vm1, %v8608_v10 }
 0xce5   : > { %8217 = vmatprep.subr.mxu1 %v8608_v10  ;;  %v5538_v46 = vand.u32 4294901760, %v5537_v45 }
 0xce7   : > { %8210 = vmatmul.mubr.f32.vlgmr.msra.gmra.mxu1 %v5538_v46  ;;  %v5539_v47 = vsub.f32 %v5537_v45, %v5538_v46 }
 0xce8   : > { %8218 = vmatpush3.msra.mxu1 %v5501_v34  ;;  %8219 = vmatprep.mubr.msk.f32.mxu1 %vm8609_vm1, %v8608_v10 }
 0xce9   : > { %v5540_v48 = vand.u32 4294901760, %v5539_v47  ;;  %8227 = vmatprep.subr.mxu1 %v8608_v10 }
 0xceb   : > { %8195 = vmatmul.mubr.f32.vlgmr.msra.gmra.mxu0 %v5540_v48  ;;  %8220 = vmatmul.mubr.f32.vlgmr.msra.gmra.mxu1 %v5536_v44 }
 0xcec   : > { %8203 = vmatpush3.msra.mxu0 %v5578_v35  ;;  %8204 = vmatprep.mubr.msk.f32.mxu0 %vm8609_vm1, %v8608_v10  ;;  %v7559_v35 = vld [vmem:[%s9605_s2 + $0x4] ss:$0 sm:$0xff] }
 0xced   : > { %8212 = vmatprep.subr.mxu0 %v8608_v10  ;;  %8229 = vmatprep.mubr.msk.f32.mxu1 %vm8609_vm1, %v8608_v10 }
 0xcee   : > { %8228 = vmatpush3.msra.mxu1 %v6031_v54 }
 0xcef   : > { %8205 = vmatmul.mubr.f32.vlgmr.msra.gmra.mxu0 %v5537_v45  ;;  %8237 = vmatprep.subr.mxu1 %v8608_v10  ;;  %v6397_v45 = vld [vmem:[%s9609_s6 + $0x8] sm:$0xff] }
 0xcf0   : > { %8213 = vmatpush3.msra.mxu0 %v5579_v36  ;;  %8214 = vmatprep.mubr.msk.f32.mxu0 %vm8609_vm1, %v8608_v10  ;;  %v8512_v36 = vld [vmem:[%s8776_s16] sm:$0xff]  ;;  %v9252_v48 = vand.u32 4294901760, %v6397_v45  ;;  %s7452_s16 = scalar_lea.sflag [#allocation4], %s8770_s18 }
 0xcf1   : > { %8222 = vmatprep.subr.mxu0 %v8608_v10 }
 0xcf2   : > { %v9266_v53 = vsub.f32 %v6397_v45, %v9252_v48 }
 0xcf3   : > { %8215 = vmatmul.mubr.f32.vlgmr.msra.gmra.mxu0 %v5536_v44  ;;  %v6398_v44 = vld [vmem:[%s9609_s6 + $0x10] sm:$0xff] }
 0xcf4   : > { %8224 = vmatprep.mubr.msk.f32.mxu0 %vm8609_vm1, %v8608_v10  ;;  %8223 = vmatpush3.msra.mxu0 %v5951_v50  ;;  %v9250_v47 = vand.u32 4294901760, %v6398_v44 }
 0xcf5   : > { %8232 = vmatprep.subr.mxu0 %v8608_v10 }
 0xda3   : > { %v5618_v55 = vpop.f32.mrf.mxu1 }
 0xda5   : > { %v8201_v18 = vpop.f32.mrf.mxu1 }
 0xda7   : > { %v5766_v56 = vpop.f32.mrf.mxu1 }
 0xda9   : > { %v8211_v57 = vpop.f32.mrf.mxu1 }
 0xdab   : > { %v5542_v58 = vpop.f32.mrf.mxu0  ;;  %v5912_v59 = vpop.f32.mrf.mxu1 }
 0xdac   : > { %v5619_v62 = vadd.f32 %v5618_v55, %v5542_v58 }
 0xdad   : > { %v8196_v60 = vpop.f32.mrf.mxu0  ;;  %v8221_v61 = vpop.f32.mrf.mxu1 }
 0xdaf   : > { %v5692_v63 = vpop.f32.mrf.mxu0 }
 0xdb0   : > { %v5693_v0 = vadd.f32 %v5692_v63, %v5619_v62 }
 0xdb1   : > { %v8206_v2 = vpop.f32.mrf.mxu0 }
 0xdb2   : > { %v5767_v3 = vadd.f32 %v5766_v56, %v5693_v0  ;;  %v6530_v56 = vand.u32 4294901760, %v9266_v53 }
 0xdb3   : > { %v5840_v4 = vpop.f32.mrf.mxu0 }
 0xdb4   : > { %v5841_v5 = vadd.f32 %v5840_v4, %v5767_v3  ;;  %v6531_v60 = vsub.f32 %v9266_v53, %v6530_v56 }
 0xdb5   : > { %v8216_v6 = vpop.f32.mrf.mxu0 }
 0xdb6   : > { %v5913_v7 = vadd.f32 %v5912_v59, %v5841_v5  ;;  %v6532_v0 = vand.u32 4294901760, %v6531_v60 }
 0xdb8   : > { %v5918_v8 = vsel %vm900_vm2, %v5913_v7, 0  ;;  %v7560_v7 = vld [vmem:[%s9605_s2 + $0x2] ss:$0 sm:$0xff] }
 0xdb9   : > { %v5986_v9 = vand.u32 4294901760, %v5918_v8 }
 0xdbb   : > { %v5987_v11 = vsub.f32 %v5918_v8, %v5986_v9  ;;  %8230 = vmatmul.mubr.f32.vlgmr.msra.gmra.mxu1 %v5986_v9 }
 0xdbc   : > { %8238 = vmatpush3.msra.mxu1 %v5951_v50  ;;  %8239 = vmatprep.mubr.msk.f32.mxu1 %vm8609_vm1, %v8608_v10 }
 0xdbd   : > { %v5988_v12 = vand.u32 4294901760, %v5987_v11  ;;  %8247 = vmatprep.subr.mxu1 %v8608_v10 }
 0xdbf   : > { %8240 = vmatmul.mubr.f32.vlgmr.msra.gmra.mxu1 %v5988_v12  ;;  %v5989_v13 = vsub.f32 %v5987_v11, %v5988_v12 }
 0xdc0   : > { %8248 = vmatpush3.msra.mxu1 %v5951_v50  ;;  %8249 = vmatprep.mubr.msk.f32.mxu1 %vm8609_vm1, %v8608_v10  ;;  %v9257_v50 = vand.u32 4294901760, %v6396_v49 }
 0xdc1   : > { %v5990_v15 = vand.u32 4294901760, %v5989_v13  ;;  %8263 = vmatprep.subr.mxu1 %v8608_v10 }
 0xdc2   : > { %v9270_v54 = vsub.f32 %v6396_v49, %v9257_v50 }
 0xdc3   : > { %8225 = vmatmul.mubr.f32.vlgmr.msra.gmra.mxu0 %v5990_v15  ;;  %8250 = vmatmul.mubr.f32.vlgmr.msra.gmra.mxu1 %v5986_v9 }
 0xdc4   : > { %8233 = vmatpush3.msra.mxu0 %v6028_v51  ;;  %8234 = vmatprep.mubr.msk.f32.mxu0 %vm8609_vm1, %v8608_v10  ;;  %v6537_v57 = vand.u32 4294901760, %v9270_v54 }
 0xdc5   : > { %8242 = vmatprep.subr.mxu0 %v8608_v10  ;;  %8271 = vmatprep.mubr.msk.f32.mxu1 %vm8609_vm1, %v8608_v10 }
 0xdc6   : > { %v6538_v63 = vsub.f32 %v9270_v54, %v6537_v57 }
 0xdc7   : > { %8235 = vmatmul.mubr.f32.vlgmr.msra.gmra.mxu0 %v5987_v11 }
 0xdc8   : > { %8243 = vmatpush3.msra.mxu0 %v6029_v52  ;;  %8244 = vmatprep.mubr.msk.f32.mxu0 %vm8609_vm1, %v8608_v10  ;;  %v9263_v52 = vsub.f32 %v6398_v44, %v9250_v47  ;;  %v6539_v2 = vand.u32 4294901760, %v6538_v63 }
 0xdc9   : > { %8252 = vmatprep.subr.mxu0 %v8608_v10 }
 0xdca   : > { %v6523_v18 = vand.u32 4294901760, %v9263_v52 }
 0xdcb   : > { %8245 = vmatmul.mubr.f32.vlgmr.msra.gmra.mxu0 %v5986_v9  ;;  %v7561_v9 = vld [vmem:[%s9605_s2 + $0x3] ss:$0 sm:$0xff] }
 0xdcc   : > { %8260 = vmatprep.mubr.msk.f32.mxu0 %vm8609_vm1, %v8608_v10  ;;  %v6524_v59 = vsub.f32 %v9263_v52, %v6523_v18 }
 0xdce   : > { %v6525_v62 = vand.u32 4294901760, %v6524_v59 }
 0xe7b   : > { %v6068_v16 = vpop.f32.mrf.mxu1 }
 0xe7d   : > { %v8231_v17 = vpop.f32.mrf.mxu1 }
 0xe7f   : > { %v6216_v19 = vpop.f32.mrf.mxu1 }
 0xe81   : > { %v8241_v20 = vpop.f32.mrf.mxu1 }
 0xe83   : > { %v5992_v21 = vpop.f32.mrf.mxu0  ;;  %v6362_v22 = vpop.f32.mrf.mxu1 }
 0xe84   : > { %v6069_v25 = vadd.f32 %v6068_v16, %v5992_v21  ;;  %v6903_v21 = vld [vmem:[%s9611_s8 + $0x38] sm:$0xff] }
 0xe85   : > { %v8226_v23 = vpop.f32.mrf.mxu0  ;;  %v8251_v24 = vpop.f32.mrf.mxu1 }
 0xe86   : > { %v6902_v23 = vld [vmem:[%s9611_s8 + $0x30] sm:$0xff] }
 0xe87   : > { %v6142_v26 = vpop.f32.mrf.mxu0 }
 0xe88   : > { %v6143_v27 = vadd.f32 %v6142_v26, %v6069_v25  ;;  %v9365_v25 = vand.u32 4294901760, %v6902_v23  ;;  %v6901_v26 = vld [vmem:[%s9611_s8 + $0x28] sm:$0xff] }
 0xe89   : > { %v8236_v28 = vpop.f32.mrf.mxu0 }
 0xe8a   : > { %v6217_v30 = vadd.f32 %v6216_v19, %v6143_v27  ;;  %v9374_v28 = vsub.f32 %v6902_v23, %v9365_v25 }
 0xe8b   : > { %v6290_v37 = vpop.f32.mrf.mxu0 }
 0xe8c   : > { %v6291_v31 = vadd.f32 %v6290_v37, %v6217_v30  ;;  %v9376_v30 = vand.u32 4294901760, %v6901_v26  ;;  %v6900_v37 = vld [vmem:[%s9611_s8 + $0x20] sm:$0xff] }
 0xe8d   : > { %v8246_v32 = vpop.f32.mrf.mxu0 }
 0xe8e   : > { %v6363_v33 = vadd.f32 %v6362_v22, %v6291_v31  ;;  %v9357_v22 = vand.u32 4294901760, %v6903_v21  ;;  %v7021_v32 = vand.u32 4294901760, %v9374_v28 }
 0xe90   : > { %v6366_v34 = vadd.f32 %v6363_v33, %v9181_v14  ;;  %v6399_v14 = vld [vmem:[%s9609_s6 + $0x18] sm:$0xff]  ;;  %v9363_v24 = vsub.f32 %v6903_v21, %v9357_v22  ;;  %v9388_v33 = vsub.f32 %v6901_v26, %v9376_v30 }
 0xe91   : > { %v9248_v46 = vand.u32 4294901760, %v6399_v14 }
 0xe92   : > { %v6367_v38 = vadd.f32 %v8512_v36, %v6366_v34  ;;  %v7014_v27 = vand.u32 4294901760, %v9363_v24  ;;  %v9390_v34 = vand.u32 4294901760, %v6900_v37 }
 0xe93   : > { %v9260_v51 = vsub.f32 %v6399_v14, %v9248_v46  ;;  %8253 = vmatpush3.msra.mxu0 %v9248_v46 }
 0xe94   : > { %v9233_v39 = vadd.f32 %v7559_v35, %v6367_v38  ;;  %8254 = vmatprep.subr.mxu0 %v8608_v10  ;;  %v7015_v31 = vsub.f32 %v9363_v24, %v7014_v27  ;;  %v6899_v35 = vld [vmem:[%s9611_s8 + $0x18] sm:$0xff]  ;;  %v7022_v38 = vsub.f32 %v9374_v28, %v7021_v32 }
 0xe95   : > { %v6516_v55 = vand.u32 4294901760, %v9260_v51  ;;  %8255 = vmatpush3.msra.mxu0 %v9250_v47 }
 0xe96   : > { %v6373_v40 = vsel %vm373_vm0, %v9233_v39, 0.0  ;;  %8256 = vmatprep.subr.mxu0 %v8608_v10  ;;  %v7016_v36 = vand.u32 4294901760, %v7015_v31 }
 0xe97   : > { %6374 = vadd.xlane.f32.xlu1 %v6373_v40  ;;  %v6517_v58 = vsub.f32 %v9260_v51, %v6516_v55  ;;  %8257 = vmatpush3.msra.mxu0 %v9252_v48  ;;  %v7028_v40 = vand.u32 4294901760, %v9388_v33 }
 0xe98   : > { %8258 = vmatprep.subr.mxu0 %v8608_v10 }
 0xe99   : > { %v6518_v61 = vand.u32 4294901760, %v6517_v58  ;;  %8259 = vmatpush3.msra.mxu0 %v9257_v50 }
 0xe9a   : > { %8274 = vmatprep.subr.mxu0 %v8608_v10 }
 0xe9b   : > { %8264 = vmatpush3.msra.mxu1 %v6518_v61 }
 0xe9c   : > { %8265 = vmatprep.subr.mxu1 %v8608_v10 }
 0xe9d   : > { %8266 = vmatpush3.msra.mxu1 %v6525_v62 }
 0xe9e   : > { %8267 = vmatprep.subr.mxu1 %v8608_v10 }
 0xe9f   : > { %8268 = vmatpush3.msra.mxu1 %v6532_v0 }
 0xea0   : > { %8269 = vmatprep.subr.mxu1 %v8608_v10 }
 0xea1   : > { %8270 = vmatpush3.msra.mxu1 %v6539_v2 }
 0xea2   : > { %8285 = vmatprep.subr.mxu1 %v8608_v10 }
 0xf20   : > { %v6375_v41 = vpop.xlane.xlu1 %6374 }
 0xf21   : > { %v6376_v1 = vmul.f32 0.03125, %v6375_v41  ;;  %v9402_v41 = vsub.f32 %v6900_v37, %v9390_v34 }
 0xf23   : > { %v6377_v29 = vsub.f32 %v9233_v39, %v6376_v1  ;;  %v9405_v1 = vand.u32 4294901760, %v6899_v35  ;;  %v7035_v14 = vand.u32 4294901760, %v9402_v41 }
 0xf25   : > { %v6378_v42 = vmul.f32 %v6377_v29, %v6377_v29  ;;  %v9419_v45 = vsub.f32 %v6899_v35, %v9405_v1 }
 0xf27   : > { %v6379_v43 = vsel %vm373_vm0, %v6378_v42, 0.0  ;;  %v7023_v42 = vand.u32 4294901760, %v7022_v38 }
 0xf28   : > { %6380 = vadd.xlane.f32.xlu0 %v6379_v43  ;;  %v7029_v43 = vsub.f32 %v9388_v33, %v7028_v40 }
 0xfb1   : > { %v6381_v3 = vpop.xlane.xlu0 %6380 }
 0xfb2   : > { %v6382_v4 = vmul.f32 0.03125, %v6381_v3 }
 0xfb4   : > { %v6383_v5 = vadd.f32 1e-06, %v6382_v4 }
 0xfb6   : > { %8509 = vrsqrt.f32 %v6383_v5 }
 0xfc3   : > { %v8510_v6 = vpop.eup %8509 }
 0xfc4   : > { %v6385_v8 = vmul.f32 %v8510_v6, %v6377_v29  ;;  %v6898_v29 = vld [vmem:[%s9611_s8 + $0x10] sm:$0xff] }
 0xfc5   : > { %v9415_v44 = vand.u32 4294901760, %v6898_v29 }
 0xfc6   : > { %v6390_v11 = vmul.f32 %v7560_v7, %v6385_v8 }
 0xfc7   : > { %v9429_v49 = vsub.f32 %v6898_v29, %v9415_v44 }
 0xfc8   : > { %v6395_v12 = vadd.f32 %v7561_v9, %v6390_v11  ;;  %v7562_v11 = vld [vmem:[%s9610_s7] ss:$0 sm:$0xff] }
 0xfca   : > { %v6408_v13 = vsel %vm373_vm0, %v6395_v12, 0 }
 0xfcb   : > { %v6479_v15 = vand.u32 4294901760, %v6408_v13 }
 0xfcd   : > { %v6480_v16 = vsub.f32 %v6408_v13, %v6479_v15  ;;  %8272 = vmatmul.mubr.f32.vlgmr.msra.gmra.mxu1 %v6479_v15 }
 0xfce   : > { %8286 = vmatpush3.msra.mxu1 %v9248_v46  ;;  %8293 = vmatprep.mubr.msk.f32.mxu1 %vm8609_vm1, %v8608_v10 }
 0xfcf   : > { %8287 = vmatprep.subr.mxu1 %v8608_v10  ;;  %v6481_v17 = vand.u32 4294901760, %v6480_v16 }
 0xfd0   : > { %8288 = vmatpush3.msra.mxu1 %v9250_v47 }
 0xfd1   : > { %8289 = vmatprep.subr.mxu1 %v8608_v10  ;;  %v6482_v19 = vsub.f32 %v6480_v16, %v6481_v17 }
 0xfd2   : > { %8290 = vmatpush3.msra.mxu1 %v9252_v48 }
 0xfd3   : > { %8291 = vmatprep.subr.mxu1 %v8608_v10  ;;  %v6483_v20 = vand.u32 4294901760, %v6482_v19 }
 0xfd4   : > { %8292 = vmatpush3.msra.mxu1 %v9257_v50 }
 0xfd5   : > { %8294 = vmatmul.mubr.f32.vlgmr.msra.gmra.mxu1 %v6481_v17  ;;  %8307 = vmatprep.subr.mxu1 %v8608_v10 }
 0xfd6   : > { %8261 = vmatmul.mubr.f32.vlgmr.msra.gmra.mxu0 %v6483_v20  ;;  %8308 = vmatpush3.msra.mxu1 %v9248_v46  ;;  %v6897_v46 = vld [vmem:[%s9611_s8 + $0x8] sm:$0xff] }
 0xfd7   : > { %8275 = vmatpush3.msra.mxu0 %v9260_v51  ;;  %8309 = vmatprep.subr.mxu1 %v8608_v10  ;;  %v7042_v51 = vand.u32 4294901760, %v9419_v45 }
 0xfd8   : > { %8276 = vmatprep.subr.mxu0 %v8608_v10  ;;  %8310 = vmatpush3.msra.mxu1 %v9250_v47  ;;  %v7030_v47 = vand.u32 4294901760, %v7029_v43 }
 0xfd9   : > { %8277 = vmatpush3.msra.mxu0 %v9263_v52  ;;  %8311 = vmatprep.subr.mxu1 %v8608_v10  ;;  %v6896_v52 = vld [vmem:[%s9611_s8] sm:$0xff] }
 0xfda   : > { %8278 = vmatprep.subr.mxu0 %v8608_v10  ;;  %8312 = vmatpush3.msra.mxu1 %v9252_v48  ;;  %v7036_v48 = vsub.f32 %v9402_v41, %v7035_v14 }
 0xfdb   : > { %8279 = vmatpush3.msra.mxu0 %v9266_v53  ;;  %8313 = vmatprep.subr.mxu1 %v8608_v10 }
 0xfdc   : > { %8280 = vmatprep.subr.mxu0 %v8608_v10  ;;  %8282 = vmatprep.mubr.msk.f32.mxu0 %vm8609_vm1, %v8608_v10  ;;  %v7037_v53 = vand.u32 4294901760, %v7036_v48 }
 0xfdd   : > { %8281 = vmatpush3.msra.mxu0 %v9270_v54  ;;  %8314 = vmatpush3.msra.mxu1 %v9257_v50  ;;  %v9431_v50 = vand.u32 4294901760, %v6897_v46  ;;  %v7049_v54 = vand.u32 4294901760, %v9429_v49 }
 0xfde   : > { %8315 = vmatprep.mubr.msk.f32.mxu1 %vm8609_vm1, %v8608_v10  ;;  %8283 = vmatmul.mubr.f32.vlgmr.msra.gmra.mxu0 %v6480_v16 }
 0xfdf   : > { %8296 = vmatprep.subr.mxu0 %v8608_v10  ;;  %8316 = vmatmul.mubr.f32.vlgmr.msra.gmra.mxu1 %v6479_v15 }
 0xfe0   : > { %8297 = vmatpush3.msra.mxu0 %v6516_v55  ;;  %8304 = vmatprep.mubr.msk.f32.mxu0 %vm8609_vm1, %v8608_v10  ;;  %v9442_v55 = vsub.f32 %v6897_v46, %v9431_v50 }
 0xfe1   : > { %8298 = vmatprep.subr.mxu0 %v8608_v10  ;;  %8337 = vmatprep.subr.mxu1 %v8608_v10 }
 0xfe2   : > { %8299 = vmatpush3.msra.mxu0 %v6523_v18  ;;  %8353 = vmatprep.mubr.msk.f32.mxu1 %vm8609_vm1, %v8608_v10  ;;  %v9444_v18 = vand.u32 4294901760, %v6896_v52  ;;  %v7056_v58 = vand.u32 4294901760, %v9442_v55 }
 0xfe3   : > { %8300 = vmatprep.subr.mxu0 %v8608_v10  ;;  %8338 = vmatpush3.msra.mxu1 %v7016_v36 }
 0xfe4   : > { %8301 = vmatpush3.msra.mxu0 %v6530_v56  ;;  %8339 = vmatprep.subr.mxu1 %v8608_v10  ;;  %v7043_v56 = vsub.f32 %v9419_v45, %v7042_v51  ;;  %v9457_v59 = vsub.f32 %v6896_v52, %v9444_v18  ;;  %v7057_v62 = vsub.f32 %v9442_v55, %v7056_v58 }
 0xfe5   : > { %8302 = vmatprep.subr.mxu0 %v8608_v10  ;;  %8340 = vmatpush3.msra.mxu1 %v7023_v42 }
 0xfe6   : > { %8303 = vmatpush3.msra.mxu0 %v6537_v57  ;;  %8341 = vmatprep.subr.mxu1 %v8608_v10  ;;  %v7050_v57 = vsub.f32 %v9429_v49, %v7049_v54  ;;  %v7044_v60 = vand.u32 4294901760, %v7043_v56  ;;  %v7063_v63 = vand.u32 4294901760, %v9457_v59  ;;  %v7058_v0 = vand.u32 4294901760, %v7057_v62 }
 0xfe7   : > { %8305 = vmatmul.mubr.f32.vlgmr.msra.gmra.mxu0 %v6479_v15  ;;  %8318 = vmatprep.subr.mxu0 %v8608_v10 }
 0xfe8   : > { %8334 = vmatprep.mubr.msk.f32.mxu0 %vm8609_vm1, %v8608_v10  ;;  %8319 = vmatpush3.msra.mxu0 %v9357_v22  ;;  %v7051_v61 = vand.u32 4294901760, %v7050_v57  ;;  %v7064_v2 = vsub.f32 %v9457_v59, %v7063_v63 }
 0xfe9   : > { %8320 = vmatprep.subr.mxu0 %v8608_v10  ;;  %8342 = vmatpush3.msra.mxu1 %v7030_v47 }
 0xfea   : > { %8321 = vmatpush3.msra.mxu0 %v9365_v25  ;;  %8343 = vmatprep.subr.mxu1 %v8608_v10  ;;  %v7065_v3 = vand.u32 4294901760, %v7064_v2 }
 0xfeb   : > { %8322 = vmatprep.subr.mxu0 %v8608_v10  ;;  %8344 = vmatpush3.msra.mxu1 %v7037_v53 }
 0xfec   : > { %8323 = vmatpush3.msra.mxu0 %v9376_v30  ;;  %8345 = vmatprep.subr.mxu1 %v8608_v10 }
 0xfed   : > { %8324 = vmatprep.subr.mxu0 %v8608_v10  ;;  %8346 = vmatpush3.msra.mxu1 %v7044_v60 }
 0xfee   : > { %8325 = vmatpush3.msra.mxu0 %v9390_v34  ;;  %8347 = vmatprep.subr.mxu1 %v8608_v10 }
 0xfef   : > { %8326 = vmatprep.subr.mxu0 %v8608_v10  ;;  %8348 = vmatpush3.msra.mxu1 %v7051_v61 }
 0xff0   : > { %8327 = vmatpush3.msra.mxu0 %v9405_v1  ;;  %8349 = vmatprep.subr.mxu1 %v8608_v10 }
 0xff1   : > { %8328 = vmatprep.subr.mxu0 %v8608_v10  ;;  %8350 = vmatpush3.msra.mxu1 %v7058_v0 }
 0xff2   : > { %8329 = vmatpush3.msra.mxu0 %v9415_v44  ;;  %8351 = vmatprep.subr.mxu1 %v8608_v10 }
 0xff3   : > { %8330 = vmatprep.subr.mxu0 %v8608_v10  ;;  %8352 = vmatpush3.msra.mxu1 %v7065_v3 }
 0xff4   : > { %8331 = vmatpush3.msra.mxu0 %v9431_v50  ;;  %8375 = vmatprep.subr.mxu1 %v8608_v10 }
 0xff5   : > { %8332 = vmatprep.subr.mxu0 %v8608_v10 }
 0xff6   : > { %8333 = vmatpush3.msra.mxu0 %v9444_v18 }
 0xff7   : > { %8356 = vmatprep.subr.mxu0 %v8608_v10 }
0x108d   : > { %v6576_v4 = vpop.f32.mrf.mxu1 }
0x108f   : > { %v8273_v5 = vpop.f32.mrf.mxu1 }
0x1095   : > { %v6733_v6 = vpop.f32.mrf.mxu1 }
0x1096   : > { %v6485_v7 = vpop.f32.mrf.mxu0 }
0x1097   : > { %v8295_v8 = vpop.f32.mrf.mxu1  ;;  %v6486_v12 = vadd.f32 %v7562_v11, %v6485_v7 }
0x1098   : > { %v8262_v9 = vpop.f32.mrf.mxu0 }
0x1099   : > { %v6577_v16 = vadd.f32 %v6576_v4, %v6486_v12 }
0x109e   : > { %v6656_v13 = vpop.f32.mrf.mxu0 }
0x109f   : > { %v6891_v15 = vpop.f32.mrf.mxu1  ;;  %v6657_v20 = vadd.f32 %v6656_v13, %v6577_v16 }
0x10a0   : > { %v8284_v17 = vpop.f32.mrf.mxu0 }
0x10a1   : > { %v8317_v19 = vpop.f32.mrf.mxu1  ;;  %v6734_v21 = vadd.f32 %v6733_v6, %v6657_v20 }
0x10a7   : > { %v6816_v23 = vpop.f32.mrf.mxu0 }
0x10a8   : > { %v6817_v26 = vadd.f32 %v6816_v23, %v6734_v21 }
0x10a9   : > { %v8306_v37 = vpop.f32.mrf.mxu0 }
0x10aa   : > { %v6892_v31 = vadd.f32 %v6891_v15, %v6817_v26 }
0x10ac   : > { %v6895_v35 = vmax.f32 %v6892_v31, 0.0 }
0x10ae   : > { %v6910_v36 = vsel %vm6908_vm3, %v6895_v35, 0 }
0x10af   : > { %v9477_v38 = vand.u32 4294901760, %v6910_v36 }
0x10b1   : > { %v6986_v29 = vsub.f32 %v6910_v36, %v9477_v38  ;;  %8354 = vmatmul.mubr.f32.vlgmr.msra.gmra.mxu1 %v9477_v38 }
0x10b2   : > { %8376 = vmatpush3.msra.mxu1 %v9357_v22  ;;  %8391 = vmatprep.mubr.msk.f32.mxu1 %vm8609_vm1, %v8608_v10 }
0x10b3   : > { %8377 = vmatprep.subr.mxu1 %v8608_v10  ;;  %v6987_v42 = vand.u32 4294901760, %v6986_v29 }
0x10b4   : > { %8378 = vmatpush3.msra.mxu1 %v9365_v25 }
0x10b5   : > { %8379 = vmatprep.subr.mxu1 %v8608_v10  ;;  %v6988_v43 = vsub.f32 %v6986_v29, %v6987_v42 }
0x10b6   : > { %8380 = vmatpush3.msra.mxu1 %v9376_v30 }
0x10b7   : > { %8381 = vmatprep.subr.mxu1 %v8608_v10  ;;  %v6989_v46 = vand.u32 4294901760, %v6988_v43 }
0x10b8   : > { %8382 = vmatpush3.msra.mxu1 %v9390_v34 }
0x10b9   : > { %8383 = vmatprep.subr.mxu1 %v8608_v10  ;;  %8335 = vmatmul.mubr.f32.vlgmr.msra.gmra.mxu0 %v6989_v46 }
0x10ba   : > { %8357 = vmatpush3.msra.mxu0 %v9363_v24  ;;  %8384 = vmatpush3.msra.mxu1 %v9405_v1 }
0x10bb   : > { %8358 = vmatprep.subr.mxu0 %v8608_v10  ;;  %8385 = vmatprep.subr.mxu1 %v8608_v10 }
0x10bc   : > { %8359 = vmatpush3.msra.mxu0 %v9374_v28  ;;  %8386 = vmatpush3.msra.mxu1 %v9415_v44 }
0x10bd   : > { %8360 = vmatprep.subr.mxu0 %v8608_v10  ;;  %8387 = vmatprep.subr.mxu1 %v8608_v10 }
0x10be   : > { %8361 = vmatpush3.msra.mxu0 %v9388_v33  ;;  %8388 = vmatpush3.msra.mxu1 %v9431_v50 }
0x10bf   : > { %8362 = vmatprep.subr.mxu0 %v8608_v10  ;;  %8389 = vmatprep.subr.mxu1 %v8608_v10 }
0x10c0   : > { %8363 = vmatpush3.msra.mxu0 %v9402_v41  ;;  %8390 = vmatpush3.msra.mxu1 %v9444_v18 }
0x10c1   : > { %8364 = vmatprep.subr.mxu0 %v8608_v10  ;;  %8392 = vmatmul.mubr.f32.vlgmr.msra.gmra.mxu1 %v6987_v42 }
0x10c2   : > { %8413 = vmatprep.subr.mxu1 %v8608_v10  ;;  %8365 = vmatpush3.msra.mxu0 %v9419_v45 }
0x10c3   : > { %8414 = vmatpush3.msra.mxu1 %v9357_v22  ;;  %8366 = vmatprep.subr.mxu0 %v8608_v10 }
0x10c4   : > { %8415 = vmatprep.subr.mxu1 %v8608_v10  ;;  %8367 = vmatpush3.msra.mxu0 %v9429_v49 }
0x10c5   : > { %8416 = vmatpush3.msra.mxu1 %v9365_v25  ;;  %8368 = vmatprep.subr.mxu0 %v8608_v10 }
0x10c6   : > { %8417 = vmatprep.subr.mxu1 %v8608_v10  ;;  %8369 = vmatpush3.msra.mxu0 %v9442_v55 }
0x10c7   : > { %8418 = vmatpush3.msra.mxu1 %v9376_v30  ;;  %8370 = vmatprep.subr.mxu0 %v8608_v10 }
0x10c8   : > { %8419 = vmatprep.subr.mxu1 %v8608_v10  ;;  %8371 = vmatpush3.msra.mxu0 %v9457_v59 }
0x10c9   : > { %8372 = vmatprep.mubr.msk.f32.mxu0 %vm8609_vm1, %v8608_v10  ;;  %8420 = vmatpush3.msra.mxu1 %v9390_v34  ;;  %v7563_v34 = vld [vmem:[%s9605_s2 + $0x5] ss:$0 sm:$0xff] }
0x10ca   : > { %8373 = vmatmul.mubr.f32.vlgmr.msra.gmra.mxu0 %v6986_v29  ;;  %8394 = vmatprep.subr.mxu0 %v8608_v10 }
0x10cb   : > { %8421 = vmatprep.subr.mxu1 %v8608_v10  ;;  %8395 = vmatpush3.msra.mxu0 %v7014_v27 }
0x10cc   : > { %8422 = vmatpush3.msra.mxu1 %v9405_v1  ;;  %8396 = vmatprep.subr.mxu0 %v8608_v10 }
0x10cd   : > { %8423 = vmatprep.subr.mxu1 %v8608_v10  ;;  %8397 = vmatpush3.msra.mxu0 %v7021_v32 }
0x10ce   : > { %8424 = vmatpush3.msra.mxu1 %v9415_v44  ;;  %8398 = vmatprep.subr.mxu0 %v8608_v10 }
0x10cf   : > { %8425 = vmatprep.subr.mxu1 %v8608_v10  ;;  %8399 = vmatpush3.msra.mxu0 %v7028_v40 }
0x10d0   : > { %8426 = vmatpush3.msra.mxu1 %v9431_v50  ;;  %8400 = vmatprep.subr.mxu0 %v8608_v10 }
0x10d1   : > { %8427 = vmatprep.subr.mxu1 %v8608_v10  ;;  %8401 = vmatpush3.msra.mxu0 %v7035_v14 }
0x10d2   : > { %8428 = vmatpush3.msra.mxu1 %v9444_v18  ;;  %8429 = vmatprep.mubr.msk.f32.mxu1 %vm8609_vm1, %v8608_v10 }
0x10d3   : > { %8402 = vmatprep.subr.mxu0 %v8608_v10  ;;  %8430 = vmatmul.mubr.f32.vlgmr.msra.gmra.mxu1 %v9477_v38 }
0x10d4   : > { %8403 = vmatpush3.msra.mxu0 %v7042_v51  ;;  %8410 = vmatprep.mubr.msk.f32.mxu0 %vm8609_vm1, %v8608_v10 }
0x10d5   : > { %8404 = vmatprep.subr.mxu0 %v8608_v10 }
0x10d6   : > { %8405 = vmatpush3.msra.mxu0 %v7049_v54 }
0x10d7   : > { %8406 = vmatprep.subr.mxu0 %v8608_v10 }
0x10d8   : > { %8407 = vmatpush3.msra.mxu0 %v7056_v58 }
0x10d9   : > { %8408 = vmatprep.subr.mxu0 %v8608_v10 }
0x10da   : > { %8409 = vmatpush3.msra.mxu0 %v7063_v63 }
0x10db   : > { %8411 = vmatmul.mubr.f32.vlgmr.msra.gmra.mxu0 %v9477_v38 }
0x1171   : > { %v7102_v22 = vpop.f32.mrf.mxu1 }
0x1173   : > { %v8355_v24 = vpop.f32.mrf.mxu1 }
0x1179   : > { %v6991_v25 = vpop.f32.mrf.mxu0 }
0x117a   : > { %v6992_v10 = vadd.f32 %v7563_v34, %v6991_v25 }
0x117b   : > { %v8336_v27 = vpop.f32.mrf.mxu0 }
0x117c   : > { %v7103_v41 = vadd.f32 %v7102_v22, %v6992_v10 }
0x1181   : > { %v7271_v28 = vpop.f32.mrf.mxu1 }
0x1183   : > { %v8393_v30 = vpop.f32.mrf.mxu1 }
0x118a   : > { %v7190_v32 = vpop.f32.mrf.mxu0 }
0x118b   : > { %v7191_v14 = vadd.f32 %v7190_v32, %v7103_v41 }
0x118c   : > { %v8374_v33 = vpop.f32.mrf.mxu0 }
0x118d   : > { %v7272_v44 = vadd.f32 %v7271_v28, %v7191_v14 }
0x1193   : > { %v7445_v40 = vpop.f32.mrf.mxu1 }
0x1195   : > { %v8431_v1 = vpop.f32.mrf.mxu1 }
0x119b   : > { %v7366_v45 = vpop.f32.mrf.mxu0 }
0x119c   : > { %v7367_v47 = vadd.f32 %v7366_v45, %v7272_v44 }
0x119d   : > { %v8412_v48 = vpop.f32.mrf.mxu0 }
0x119e   : > { %v7446_v49 = vadd.f32 %v7445_v40, %v7367_v47 }
0x11a0   : > { %v7449_v50 = vadd.f32 %v7446_v49, %v9233_v39 }
0x11a2   : > { %7450 = vst.msk [vmem:[%s360_s19] sm:$0xff] %vm373_vm0, %v7449_v50 }
0x11a3   : > { %8554 = shalt.err (!%p8551_p2)
}
0x11a4   : > { %s8555_s14 = scalar_lea.hbm %s7463_s24, 128  ;;  %s8559_s20 = scalar_lea.hbm %s9612_s9, 256 }
0x11a5   : > { %p8556_p4 = scmp.ne.s32.totalorder %s7463_s24, %s8555_s14  ;;  %p8560_p0 = scmp.lt.s32.totalorder %s7463_s24, %s9612_s9 }
0x11a6   : > { %p8561_p6 = scmp.lt.s32.totalorder %s8559_s20, %s8555_s14 }
0x11a7   : > { %p8557_p9 = pnand %p8556_p4, %p9626_p13 }
0x11a8   : > { %p8562_p11 = por %p8561_p6, %p8560_p0 }
0x11a9   : > { %p8558_p7 = pneg %p8557_p9 }
0x11ab   : > { %p8563_p12 = pnand %p8562_p11, %p8558_p7 }
0x11ad   : > { %8566 = shalt.err (!%p8563_p12)
}
0x11ae   : > { %8434 = dma.vmem_to_hbm [thread:$0]  (%p9626_p13), %s7466_s26, 128, %s7463_s24, %s7452_s16  }
0x11af PF: > { %s7477_s27 = sand.u32 1, %s8593_s30   ;;  %p9627_p1 = scmp.ne.s32.totalorder %s9621_s22, 0 }
0x11b0   : > { %p9628_p3 = scmp.ge.s32.totalorder %s8605_s12, 2  ;;  %s7478_s23 = scalar_lea.sflag [#allocation4], %s7477_s27 }
0x11b2   : > { %p8441_p5 = pnand %p9628_p3, %p9627_p1 }
0x11b4   : > { %p8442_p8 = pneg %p8441_p5 }
0x11b6   : > { %8588 = dma.done.wait (%p8442_p8), %s7478_s23, 128  }
0x11b7   : > { %8590 = vsyncadd (%p8442_p8), %s7478_s23, 4294967168  ;;  %s9629_s25 = sld [smem:[#allocation8_spill]]  ;;  %p22_p10 = scmp.ge.s32.totalorder %s8697_s15, 4  }
0x11b8   : > { %s9630_s11 = sld [smem:[#allocation9_spill]]  ;;  %s9631_s30 = smov %s8597_s10 }
0x11b9   : > { %s9633_s12 = smov %s8697_s15  ;;  %24 = sbr.rel (!%p22_p10) target bundleno = 5 (0x5), region = 104 }
0x11bd   : > { %s9632_s10 = smov %s9629_s25 }
0x11be   :  { %7483 = vsyncpa [#allocation3], 1 }
0x11bf   :  { %7485 = vsyncpa [#allocation3 + $0x1], 1 }
0x11c0   :  { %7486 = vsyncpa [#allocation4], 1 }
0x11c1   :  { %7488 = vsyncpa [#allocation4 + $0x1], 1 }

</bundles_post_ra>
